<compile_context>
chip_gen: v6e
topology: v6e:2x2x1
jax: 0.10.0
libtpu: 0.0.40
codegen_flags: <defaults>
</compile_context>

<pallas_src>
import functools

import jax
import jax.numpy as jnp
from jax.experimental import pallas as pl
from jax.experimental.pallas import tpu as pltpu


# ------------------------------ fused kernel -------------------------------

def _fused_chain_kernel(x_ref, w1b_ref, w2b_ref, h1_ref, y_ref,
                        rhs1_sc, rhs2_sc, h1s_sc, *, cin, c1, c2, l, wpad):
    """conv1(3x3)+bias+ReLU -> conv2(3x3)+bias+ReLU, all resident in VMEM.

    Layout: activations are (channels, flattened padded pixels); a 3x3 tap
    (kh, kw) is a lane shift of (kh-1)*Wp + (kw-1) on the pixel axis.  The 9
    taps are stacked on the contraction axis so each conv is ONE MXU matmul.
    """
    sb = wpad + 1                       # largest |tap shift| (one row + col)
    k1, k2 = 9 * cin, 9 * c1
    shifts = tuple((kh - 1) * wpad + (kw - 1)
                   for kh in range(3) for kw in range(3))

    # ---- conv1: stack 9 shifted tap slices into one (9*Cin, L) RHS, one dot.
    for t, sh in enumerate(shifts):
        rhs1_sc[t * cin:(t + 1) * cin, :] = x_ref[0:cin, sb + sh: sb + sh + l]
    acc1 = jnp.dot(w1b_ref[:, 0:k1], rhs1_sc[...],
                   preferred_element_type=jnp.float32)

    mask = x_ref[cin:cin + 1, sb: sb + l]      # core-pixel mask (rides with x)
    b1 = w1b_ref[:, k1:k1 + 1]                 # bias folded as last weight col
    # fused bias + ReLU; the masked ring doubles as conv2's SAME zero padding.
    h1 = jnp.where(mask > 0.0, jnp.maximum(acc1 + b1, 0.0), 0.0)

    # selected activation "relu1": lane-dense store straight from registers.
    h1_ref[...] = h1

    # conv2 handoff: zero tap margins + the relu1 block, all in VMEM scratch.
    h1s_sc[:, 0:sb] = jnp.zeros((c1, sb), jnp.float32)
    h1s_sc[:, sb + l:] = jnp.zeros((c1, sb), jnp.float32)
    h1s_sc[:, sb: sb + l] = h1

    # ---- conv2: same tap-packing (K = 9*C1), one dot, fused bias + ReLU.
    for t, sh in enumerate(shifts):
        rhs2_sc[t * c1:(t + 1) * c1, :] = h1s_sc[:, sb + sh: sb + sh + l]
    acc2 = jnp.dot(w2b_ref[:, 0:k2], rhs2_sc[...],
                   preferred_element_type=jnp.float32)
    b2 = w2b_ref[:, k2:k2 + 1]
    # selected activation "relu2": lane-dense store.
    y_ref[...] = jnp.maximum(acc2 + b2, 0.0)


# ------------------------------ host wrappers -------------------------------

def _core_to_nchw(flat_cl, N, H, W):
    """(C, N*(H+2)*(W+2)) padded-pixel layout -> NCHW core (N, C, H, W)."""
    C = flat_cl.shape[0]
    t = flat_cl.reshape(C, N, H + 2, W + 2)[:, :, 1:H + 1, 1:W + 1]
    return jnp.transpose(t, (1, 0, 2, 3))


def fused_conv_relu_chain(x_nchw, w1, b1, w2, b2):
    """conv1(3x3,SAME)+ReLU -> conv2(3x3,SAME)+ReLU as one Pallas kernel.

    Returns (relu1, relu2), both NCHW float32.
    """
    N, Cin, H, W = x_nchw.shape
    C1, C2 = w1.shape[0], w2.shape[0]
    HP, WP = H + 2, W + 2
    L = N * HP * WP                    # flattened padded pixels (lane axis)
    SB = WP + 1                        # max |tap shift|
    T = L + 2 * SB                     # input slab width (zero tap margins)
    K1, K2 = 9 * Cin, 9 * C1

    # --- input slab: ring-padded NCHW -> (Cin, L) channels-first flat layout,
    #     plus a core-pixel mask row, plus SB-wide zero tap margins.  ONE DMA.
    xpad = jnp.pad(x_nchw.astype(jnp.float32),
                   ((0, 0), (0, 0), (1, 1), (1, 1)))            # (N,Cin,HP,WP)
    xflat = jnp.transpose(xpad, (1, 0, 2, 3)).reshape(Cin, L)   # (Cin, L)
    j = jnp.arange(L)
    hp = (j % (HP * WP)) // WP
    wp = j % WP
    core = (hp >= 1) & (hp <= H) & (wp >= 1) & (wp <= W)
    slab = jnp.concatenate([xflat, core.astype(jnp.float32)[None, :]], axis=0)
    xin = jnp.pad(slab, ((0, 0), (SB, SB)))                     # (Cin+1, T)

    # --- packed weights: columns are tap-major (kh, kw) then input channel so
    #     they line up with the stacked RHS rows; bias folded as last column.
    w1b = jnp.concatenate(
        [jnp.transpose(w1, (0, 2, 3, 1)).reshape(C1, K1),
         b1.reshape(C1, 1)], axis=1).astype(jnp.float32)        # (C1, K1+1)
    w2b = jnp.concatenate(
        [jnp.transpose(w2, (0, 2, 3, 1)).reshape(C2, K2),
         b2.reshape(C2, 1)], axis=1).astype(jnp.float32)        # (C2, K2+1)

    kernel = functools.partial(_fused_chain_kernel,
                               cin=Cin, c1=C1, c2=C2, l=L, wpad=WP)
    h1_flat, y_flat = pl.pallas_call(
        kernel,
        out_shape=(jax.ShapeDtypeStruct((C1, L), jnp.float32),
                   jax.ShapeDtypeStruct((C2, L), jnp.float32)),
        grid=(1,),
        in_specs=[
            pl.BlockSpec((Cin + 1, T), lambda i: (0, 0)),
            pl.BlockSpec((C1, K1 + 1), lambda i: (0, 0)),
            pl.BlockSpec((C2, K2 + 1), lambda i: (0, 0)),
        ],
        out_specs=(pl.BlockSpec((C1, L), lambda i: (0, 0)),
                   pl.BlockSpec((C2, L), lambda i: (0, 0))),
        scratch_shapes=[pltpu.VMEM((K1, L), jnp.float32),   # stacked RHS conv1
                        pltpu.VMEM((K2, L), jnp.float32),   # stacked RHS conv2
                        pltpu.VMEM((C1, T), jnp.float32)],  # relu1 + margins
        compiler_params=pltpu.CompilerParams(
            dimension_semantics=("arbitrary",)),
    )(xin, w1b, w2b)

    return _core_to_nchw(h1_flat, N, H, W), _core_to_nchw(y_flat, N, H, W)


# --------------------------- SelectiveSequential ----------------------------

class SelectiveSequentialPallas:
    """Pallas mirror of SelectiveSequential for the chain
    [("conv1", Conv2d), ("relu1", ReLU), ("conv2", Conv2d), ("relu2", ReLU)].

    forward() semantics match the PyTorch module: modules run in order and the
    activations named in `to_select` are returned in execution order.  The
    whole chain executes as ONE fused pallas_call; the fused ReLU epilogue
    outputs ARE the selected activations.
    """

    _ORDER = ("conv1", "relu1", "conv2", "relu2")

    def __init__(self, to_select, w1, b1, w2, b2):
        self._to_select = list(to_select)
        self._params = (w1, b1, w2, b2)
        # TODO(synk): pre-activation "conv1"/"conv2" outputs are not exported
        # by the fused kernel; selecting them would need extra kernel outputs.
        unsupported = set(self._to_select) - {"relu1", "relu2"}
        if unsupported:
            raise NotImplementedError(f"cannot select {sorted(unsupported)}")

    def __call__(self, x_nchw):
        relu1, relu2 = fused_conv_relu_chain(x_nchw, *self._params)
        acts = {"relu1": relu1, "relu2": relu2}
        return [acts[n] for n in self._ORDER if n in self._to_select]


# --------------------------------- main -------------------------------------

def _ref_conv(x, w, b):
    out = jax.lax.conv_general_dilated(
        x, w, window_strides=(1, 1), padding="SAME",
        dimension_numbers=("NCHW", "OIHW", "NCHW"))
    return out + b.reshape(1, -1, 1, 1)


if __name__ == "__main__":
    key = jax.random.PRNGKey(0)
    k_x, k_w1, k_b1, k_w2, k_b2 = jax.random.split(key, 5)

    # Small shapes consistent with the module (NCHW input).
    N, Cin, H, W = 2, 4, 16, 16
    C1, C2 = 8, 8

    x = jax.random.normal(k_x, (N, Cin, H, W), dtype=jnp.float32)
    w1 = jax.random.uniform(k_w1, (C1, Cin, 3, 3), jnp.float32, -0.2, 0.2)
    b1 = jax.random.uniform(k_b1, (C1,), jnp.float32, -0.1, 0.1)
    w2 = jax.random.uniform(k_w2, (C2, C1, 3, 3), jnp.float32, -0.2, 0.2)
    b2 = jax.random.uniform(k_b2, (C2,), jnp.float32, -0.1, 0.1)

    net = SelectiveSequentialPallas(["relu1", "relu2"], w1, b1, w2, b2)
    outs = jax.block_until_ready(net(x))

    # Reference check against plain-JAX forward.
    r1 = jnp.maximum(_ref_conv(x, w1, b1), 0.0)
    r2 = jnp.maximum(_ref_conv(r1, w2, b2), 0.0)
    assert len(outs) == 2
    assert outs[0].shape == (N, C1, H, W) and outs[1].shape == (N, C2, H, W)
    assert jnp.allclose(outs[0], r1, atol=1e-4, rtol=1e-4), \
        float(jnp.max(jnp.abs(outs[0] - r1)))
    assert jnp.allclose(outs[1], r2, atol=1e-4, rtol=1e-4), \
        float(jnp.max(jnp.abs(outs[1] - r2)))

    print("KERNEL_OK")
</pallas_src>

<mosaic_0001>
module attributes {stable_mosaic.version = 11 : i64} {
  func.func @_fused_chain_kernel(%arg0: i32, %arg1: memref<5x686xf32, #tpu.memory_space<vmem>>, %arg2: memref<8x37xf32, #tpu.memory_space<vmem>>, %arg3: memref<8x73xf32, #tpu.memory_space<vmem>>, %arg4: memref<8x648xf32, #tpu.memory_space<vmem>>, %arg5: memref<8x648xf32, #tpu.memory_space<vmem>>, %arg6: memref<36x648xf32, #tpu.memory_space<vmem>>, %arg7: memref<72x648xf32, #tpu.memory_space<vmem>>, %arg8: memref<8x686xf32, #tpu.memory_space<vmem>>) attributes {dimension_semantics = [#tpu.dimension_semantics<arbitrary>], iteration_bounds = array<i64: 1>, scalar_prefetch = 0 : i64, scratch_operands = 3 : i64, tpu.core_type = #tpu.core_type<tc>, window_params = [{pipeline_mode = #tpu.pipeline_mode<synchronous>, transform_indices = @transform_0, window_bounds = array<i64: 5, 686>}, {pipeline_mode = #tpu.pipeline_mode<synchronous>, transform_indices = @transform_1, window_bounds = array<i64: 8, 37>}, {pipeline_mode = #tpu.pipeline_mode<synchronous>, transform_indices = @transform_2, window_bounds = array<i64: 8, 73>}, {pipeline_mode = #tpu.pipeline_mode<synchronous>, transform_indices = @transform_3, window_bounds = array<i64: 8, 648>}, {pipeline_mode = #tpu.pipeline_mode<synchronous>, transform_indices = @transform_4, window_bounds = array<i64: 8, 648>}]} {
    %c0 = arith.constant 0 : index
    %c0_0 = arith.constant 0 : index
    %0 = vector.load %arg1[%c0, %c0_0] : memref<5x686xf32, #tpu.memory_space<vmem>>, vector<4x648xf32>
    %c0_1 = arith.constant 0 : index
    %c0_2 = arith.constant 0 : index
    %1 = vector.load %arg6[%c0_1, %c0_2] : memref<36x648xf32, #tpu.memory_space<vmem>>, vector<4x648xf32>
    tpu.vector_store %arg6[%c0_1, %c0_2], %0 {strides = array<i32>} : memref<36x648xf32, #tpu.memory_space<vmem>>, vector<4x648xf32>,
    %c0_3 = arith.constant 0 : index
    %c1 = arith.constant 1 : index
    %2 = vector.load %arg1[%c0_3, %c1] : memref<5x686xf32, #tpu.memory_space<vmem>>, vector<4x648xf32>
    %c4 = arith.constant 4 : index
    %c0_4 = arith.constant 0 : index
    %3 = vector.load %arg6[%c4, %c0_4] : memref<36x648xf32, #tpu.memory_space<vmem>>, vector<4x648xf32>
    tpu.vector_store %arg6[%c4, %c0_4], %2 {strides = array<i32>} : memref<36x648xf32, #tpu.memory_space<vmem>>, vector<4x648xf32>,
    %c0_5 = arith.constant 0 : index
    %c2 = arith.constant 2 : index
    %4 = vector.load %arg1[%c0_5, %c2] : memref<5x686xf32, #tpu.memory_space<vmem>>, vector<4x648xf32>
    %c8 = arith.constant 8 : index
    %c0_6 = arith.constant 0 : index
    %5 = vector.load %arg6[%c8, %c0_6] : memref<36x648xf32, #tpu.memory_space<vmem>>, vector<4x648xf32>
    tpu.vector_store %arg6[%c8, %c0_6], %4 {strides = array<i32>} : memref<36x648xf32, #tpu.memory_space<vmem>>, vector<4x648xf32>,
    %c0_7 = arith.constant 0 : index
    %c18 = arith.constant 18 : index
    %6 = vector.load %arg1[%c0_7, %c18] : memref<5x686xf32, #tpu.memory_space<vmem>>, vector<4x648xf32>
    %c12 = arith.constant 12 : index
    %c0_8 = arith.constant 0 : index
    %7 = vector.load %arg6[%c12, %c0_8] : memref<36x648xf32, #tpu.memory_space<vmem>>, vector<4x648xf32>
    tpu.vector_store %arg6[%c12, %c0_8], %6 {strides = array<i32>} : memref<36x648xf32, #tpu.memory_space<vmem>>, vector<4x648xf32>,
    %c0_9 = arith.constant 0 : index
    %c19 = arith.constant 19 : index
    %8 = vector.load %arg1[%c0_9, %c19] : memref<5x686xf32, #tpu.memory_space<vmem>>, vector<4x648xf32>
    %c16 = arith.constant 16 : index
    %c0_10 = arith.constant 0 : index
    %9 = vector.load %arg6[%c16, %c0_10] : memref<36x648xf32, #tpu.memory_space<vmem>>, vector<4x648xf32>
    tpu.vector_store %arg6[%c16, %c0_10], %8 {strides = array<i32>} : memref<36x648xf32, #tpu.memory_space<vmem>>, vector<4x648xf32>,
    %c0_11 = arith.constant 0 : index
    %c20 = arith.constant 20 : index
    %10 = vector.load %arg1[%c0_11, %c20] : memref<5x686xf32, #tpu.memory_space<vmem>>, vector<4x648xf32>
    %c20_12 = arith.constant 20 : index
    %c0_13 = arith.constant 0 : index
    %11 = vector.load %arg6[%c20_12, %c0_13] : memref<36x648xf32, #tpu.memory_space<vmem>>, vector<4x648xf32>
    tpu.vector_store %arg6[%c20_12, %c0_13], %10 {strides = array<i32>} : memref<36x648xf32, #tpu.memory_space<vmem>>, vector<4x648xf32>,
    %c0_14 = arith.constant 0 : index
    %c36 = arith.constant 36 : index
    %12 = vector.load %arg1[%c0_14, %c36] : memref<5x686xf32, #tpu.memory_space<vmem>>, vector<4x648xf32>
    %c24 = arith.constant 24 : index
    %c0_15 = arith.constant 0 : index
    %13 = vector.load %arg6[%c24, %c0_15] : memref<36x648xf32, #tpu.memory_space<vmem>>, vector<4x648xf32>
    tpu.vector_store %arg6[%c24, %c0_15], %12 {strides = array<i32>} : memref<36x648xf32, #tpu.memory_space<vmem>>, vector<4x648xf32>,
    %c0_16 = arith.constant 0 : index
    %c37 = arith.constant 37 : index
    %14 = vector.load %arg1[%c0_16, %c37] : memref<5x686xf32, #tpu.memory_space<vmem>>, vector<4x648xf32>
    %c28 = arith.constant 28 : index
    %c0_17 = arith.constant 0 : index
    %15 = vector.load %arg6[%c28, %c0_17] : memref<36x648xf32, #tpu.memory_space<vmem>>, vector<4x648xf32>
    tpu.vector_store %arg6[%c28, %c0_17], %14 {strides = array<i32>} : memref<36x648xf32, #tpu.memory_space<vmem>>, vector<4x648xf32>,
    %c0_18 = arith.constant 0 : index
    %c38 = arith.constant 38 : index
    %16 = vector.load %arg1[%c0_18, %c38] : memref<5x686xf32, #tpu.memory_space<vmem>>, vector<4x648xf32>
    %c32 = arith.constant 32 : index
    %c0_19 = arith.constant 0 : index
    %17 = vector.load %arg6[%c32, %c0_19] : memref<36x648xf32, #tpu.memory_space<vmem>>, vector<4x648xf32>
    tpu.vector_store %arg6[%c32, %c0_19], %16 {strides = array<i32>} : memref<36x648xf32, #tpu.memory_space<vmem>>, vector<4x648xf32>,
    %c0_20 = arith.constant 0 : index
    %c0_21 = arith.constant 0 : index
    %18 = vector.load %arg2[%c0_20, %c0_21] : memref<8x37xf32, #tpu.memory_space<vmem>>, vector<8x36xf32>
    %c0_22 = arith.constant 0 : index
    %c0_23 = arith.constant 0 : index
    %19 = vector.load %arg6[%c0_22, %c0_23] : memref<36x648xf32, #tpu.memory_space<vmem>>, vector<36x648xf32>
    %cst = arith.constant dense<0.000000e+00> : vector<8x648xf32>
    %20 = tpu.matmul %18, %19, %cst {dimension_numbers = #tpu.dot_dimension_numbers<[1], [0], [0], [1], [0, 0, 1, 1], [], []>} : vector<8x36xf32>, vector<36x648xf32>, vector<8x648xf32> -> vector<8x648xf32>
    %c4_24 = arith.constant 4 : index
    %c19_25 = arith.constant 19 : index
    %21 = vector.load %arg1[%c4_24, %c19_25] : memref<5x686xf32, #tpu.memory_space<vmem>>, vector<1x648xf32>
    %c0_26 = arith.constant 0 : index
    %c36_27 = arith.constant 36 : index
    %22 = vector.load %arg2[%c0_26, %c36_27] : memref<8x37xf32, #tpu.memory_space<vmem>>, vector<8x1xf32>
    %cst_28 = arith.constant 0.000000e+00 : f32
    %23 = vector.broadcast %cst_28 : f32 to vector<1x648xf32>
    %24 = arith.cmpf ogt, %21, %23 : vector<1x648xf32>
    %25 = vector.broadcast %22 : vector<8x1xf32> to vector<8x648xf32>
    %26 = arith.addf %20, %25 : vector<8x648xf32>
    %cst_29 = arith.constant 0.000000e+00 : f32
    %27 = vector.broadcast %cst_29 : f32 to vector<8x648xf32>
    %28 = arith.maximumf %26, %27 : vector<8x648xf32>
    %cst_30 = arith.constant 0.000000e+00 : f32
    %29 = vector.shape_cast %24 : vector<1x648xi1> to vector<1x648xi1>
    %30 = vector.broadcast %29 : vector<1x648xi1> to vector<8x648xi1>
    %31 = vector.broadcast %cst_30 : f32 to vector<8x648xf32>
    %32 = arith.select %30, %28, %31 : vector<8x648xi1>, vector<8x648xf32>
    %c0_31 = arith.constant 0 : index
    %c0_32 = arith.constant 0 : index
    %33 = vector.load %arg4[%c0_31, %c0_32] : memref<8x648xf32, #tpu.memory_space<vmem>>, vector<8x648xf32>
    tpu.vector_store %arg4[%c0_31, %c0_32], %32 {strides = array<i32>} : memref<8x648xf32, #tpu.memory_space<vmem>>, vector<8x648xf32>,
    %cst_33 = arith.constant 0.000000e+00 : f32
    %34 = vector.broadcast %cst_33 : f32 to vector<8x19xf32>
    %c0_34 = arith.constant 0 : index
    %c0_35 = arith.constant 0 : index
    %35 = vector.load %arg8[%c0_34, %c0_35] : memref<8x686xf32, #tpu.memory_space<vmem>>, vector<8x19xf32>
    tpu.vector_store %arg8[%c0_34, %c0_35], %34 {strides = array<i32>} : memref<8x686xf32, #tpu.memory_space<vmem>>, vector<8x19xf32>,
    %cst_36 = arith.constant 0.000000e+00 : f32
    %36 = vector.broadcast %cst_36 : f32 to vector<8x19xf32>
    %c0_37 = arith.constant 0 : index
    %c667 = arith.constant 667 : index
    %37 = vector.load %arg8[%c0_37, %c667] : memref<8x686xf32, #tpu.memory_space<vmem>>, vector<8x19xf32>
    tpu.vector_store %arg8[%c0_37, %c667], %36 {strides = array<i32>} : memref<8x686xf32, #tpu.memory_space<vmem>>, vector<8x19xf32>,
    %c0_38 = arith.constant 0 : index
    %c19_39 = arith.constant 19 : index
    %38 = vector.load %arg8[%c0_38, %c19_39] : memref<8x686xf32, #tpu.memory_space<vmem>>, vector<8x648xf32>
    tpu.vector_store %arg8[%c0_38, %c19_39], %32 {strides = array<i32>} : memref<8x686xf32, #tpu.memory_space<vmem>>, vector<8x648xf32>,
    %c0_40 = arith.constant 0 : index
    %c0_41 = arith.constant 0 : index
    %39 = vector.load %arg8[%c0_40, %c0_41] : memref<8x686xf32, #tpu.memory_space<vmem>>, vector<8x648xf32>
    %c0_42 = arith.constant 0 : index
    %c0_43 = arith.constant 0 : index
    %40 = vector.load %arg7[%c0_42, %c0_43] : memref<72x648xf32, #tpu.memory_space<vmem>>, vector<8x648xf32>
    tpu.vector_store %arg7[%c0_42, %c0_43], %39 {strides = array<i32>} : memref<72x648xf32, #tpu.memory_space<vmem>>, vector<8x648xf32>,
    %c0_44 = arith.constant 0 : index
    %c1_45 = arith.constant 1 : index
    %41 = vector.load %arg8[%c0_44, %c1_45] : memref<8x686xf32, #tpu.memory_space<vmem>>, vector<8x648xf32>
    %c8_46 = arith.constant 8 : index
    %c0_47 = arith.constant 0 : index
    %42 = vector.load %arg7[%c8_46, %c0_47] : memref<72x648xf32, #tpu.memory_space<vmem>>, vector<8x648xf32>
    tpu.vector_store %arg7[%c8_46, %c0_47], %41 {strides = array<i32>} : memref<72x648xf32, #tpu.memory_space<vmem>>, vector<8x648xf32>,
    %c0_48 = arith.constant 0 : index
    %c2_49 = arith.constant 2 : index
    %43 = vector.load %arg8[%c0_48, %c2_49] : memref<8x686xf32, #tpu.memory_space<vmem>>, vector<8x648xf32>
    %c16_50 = arith.constant 16 : index
    %c0_51 = arith.constant 0 : index
    %44 = vector.load %arg7[%c16_50, %c0_51] : memref<72x648xf32, #tpu.memory_space<vmem>>, vector<8x648xf32>
    tpu.vector_store %arg7[%c16_50, %c0_51], %43 {strides = array<i32>} : memref<72x648xf32, #tpu.memory_space<vmem>>, vector<8x648xf32>,
    %c0_52 = arith.constant 0 : index
    %c18_53 = arith.constant 18 : index
    %45 = vector.load %arg8[%c0_52, %c18_53] : memref<8x686xf32, #tpu.memory_space<vmem>>, vector<8x648xf32>
    %c24_54 = arith.constant 24 : index
    %c0_55 = arith.constant 0 : index
    %46 = vector.load %arg7[%c24_54, %c0_55] : memref<72x648xf32, #tpu.memory_space<vmem>>, vector<8x648xf32>
    tpu.vector_store %arg7[%c24_54, %c0_55], %45 {strides = array<i32>} : memref<72x648xf32, #tpu.memory_space<vmem>>, vector<8x648xf32>,
    %c0_56 = arith.constant 0 : index
    %c19_57 = arith.constant 19 : index
    %47 = vector.load %arg8[%c0_56, %c19_57] : memref<8x686xf32, #tpu.memory_space<vmem>>, vector<8x648xf32>
    %c32_58 = arith.constant 32 : index
    %c0_59 = arith.constant 0 : index
    %48 = vector.load %arg7[%c32_58, %c0_59] : memref<72x648xf32, #tpu.memory_space<vmem>>, vector<8x648xf32>
    tpu.vector_store %arg7[%c32_58, %c0_59], %47 {strides = array<i32>} : memref<72x648xf32, #tpu.memory_space<vmem>>, vector<8x648xf32>,
    %c0_60 = arith.constant 0 : index
    %c20_61 = arith.constant 20 : index
    %49 = vector.load %arg8[%c0_60, %c20_61] : memref<8x686xf32, #tpu.memory_space<vmem>>, vector<8x648xf32>
    %c40 = arith.constant 40 : index
    %c0_62 = arith.constant 0 : index
    %50 = vector.load %arg7[%c40, %c0_62] : memref<72x648xf32, #tpu.memory_space<vmem>>, vector<8x648xf32>
    tpu.vector_store %arg7[%c40, %c0_62], %49 {strides = array<i32>} : memref<72x648xf32, #tpu.memory_space<vmem>>, vector<8x648xf32>,
    %c0_63 = arith.constant 0 : index
    %c36_64 = arith.constant 36 : index
    %51 = vector.load %arg8[%c0_63, %c36_64] : memref<8x686xf32, #tpu.memory_space<vmem>>, vector<8x648xf32>
    %c48 = arith.constant 48 : index
    %c0_65 = arith.constant 0 : index
    %52 = vector.load %arg7[%c48, %c0_65] : memref<72x648xf32, #tpu.memory_space<vmem>>, vector<8x648xf32>
    tpu.vector_store %arg7[%c48, %c0_65], %51 {strides = array<i32>} : memref<72x648xf32, #tpu.memory_space<vmem>>, vector<8x648xf32>,
    %c0_66 = arith.constant 0 : index
    %c37_67 = arith.constant 37 : index
    %53 = vector.load %arg8[%c0_66, %c37_67] : memref<8x686xf32, #tpu.memory_space<vmem>>, vector<8x648xf32>
    %c56 = arith.constant 56 : index
    %c0_68 = arith.constant 0 : index
    %54 = vector.load %arg7[%c56, %c0_68] : memref<72x648xf32, #tpu.memory_space<vmem>>, vector<8x648xf32>
    tpu.vector_store %arg7[%c56, %c0_68], %53 {strides = array<i32>} : memref<72x648xf32, #tpu.memory_space<vmem>>, vector<8x648xf32>,
    %c0_69 = arith.constant 0 : index
    %c38_70 = arith.constant 38 : index
    %55 = vector.load %arg8[%c0_69, %c38_70] : memref<8x686xf32, #tpu.memory_space<vmem>>, vector<8x648xf32>
    %c64 = arith.constant 64 : index
    %c0_71 = arith.constant 0 : index
    %56 = vector.load %arg7[%c64, %c0_71] : memref<72x648xf32, #tpu.memory_space<vmem>>, vector<8x648xf32>
    tpu.vector_store %arg7[%c64, %c0_71], %55 {strides = array<i32>} : memref<72x648xf32, #tpu.memory_space<vmem>>, vector<8x648xf32>,
    %c0_72 = arith.constant 0 : index
    %c0_73 = arith.constant 0 : index
    %57 = vector.load %arg3[%c0_72, %c0_73] : memref<8x73xf32, #tpu.memory_space<vmem>>, vector<8x72xf32>
    %c0_74 = arith.constant 0 : index
    %c0_75 = arith.constant 0 : index
    %58 = vector.load %arg7[%c0_74, %c0_75] : memref<72x648xf32, #tpu.memory_space<vmem>>, vector<72x648xf32>
    %cst_76 = arith.constant dense<0.000000e+00> : vector<8x648xf32>
    %59 = tpu.matmul %57, %58, %cst_76 {dimension_numbers = #tpu.dot_dimension_numbers<[1], [0], [0], [1], [0, 0, 1, 1], [], []>} : vector<8x72xf32>, vector<72x648xf32>, vector<8x648xf32> -> vector<8x648xf32>
    %c0_77 = arith.constant 0 : index
    %c72 = arith.constant 72 : index
    %60 = vector.load %arg3[%c0_77, %c72] : memref<8x73xf32, #tpu.memory_space<vmem>>, vector<8x1xf32>
    %61 = vector.broadcast %60 : vector<8x1xf32> to vector<8x648xf32>
    %62 = arith.addf %59, %61 : vector<8x648xf32>
    %cst_78 = arith.constant 0.000000e+00 : f32
    %63 = vector.broadcast %cst_78 : f32 to vector<8x648xf32>
    %64 = arith.maximumf %62, %63 : vector<8x648xf32>
    %c0_79 = arith.constant 0 : index
    %c0_80 = arith.constant 0 : index
    %65 = vector.load %arg5[%c0_79, %c0_80] : memref<8x648xf32, #tpu.memory_space<vmem>>, vector<8x648xf32>
    tpu.vector_store %arg5[%c0_79, %c0_80], %64 {strides = array<i32>} : memref<8x648xf32, #tpu.memory_space<vmem>>, vector<8x648xf32>,
    return
  }
  func.func @transform_0(%arg0: i32) -> (i32, i32) {
    %c0_i32 = arith.constant 0 : i32
    %c0_i32_0 = arith.constant 0 : i32
    %c0_i32_1 = arith.constant 0 : i32
    return %c0_i32, %c0_i32_0 : i32, i32
  }
  func.func @transform_1(%arg0: i32) -> (i32, i32) {
    %c0_i32 = arith.constant 0 : i32
    %c0_i32_0 = arith.constant 0 : i32
    %c0_i32_1 = arith.constant 0 : i32
    return %c0_i32, %c0_i32_0 : i32, i32
  }
  func.func @transform_2(%arg0: i32) -> (i32, i32) {
    %c0_i32 = arith.constant 0 : i32
    %c0_i32_0 = arith.constant 0 : i32
    %c0_i32_1 = arith.constant 0 : i32
    return %c0_i32, %c0_i32_0 : i32, i32
  }
  func.func @transform_3(%arg0: i32) -> (i32, i32) {
    %c0_i32 = arith.constant 0 : i32
    %c0_i32_0 = arith.constant 0 : i32
    %c0_i32_1 = arith.constant 0 : i32
    return %c0_i32, %c0_i32_0 : i32, i32
  }
  func.func @transform_4(%arg0: i32) -> (i32, i32) {
    %c0_i32 = arith.constant 0 : i32
    %c0_i32_0 = arith.constant 0 : i32
    %c0_i32_1 = arith.constant 0 : i32
    return %c0_i32, %c0_i32_0 : i32, i32
  }
}

</mosaic_0001>

<bundles_post_ra>
// kernel: tpu_custom_call.1
= control target key start
LH: loop header
LB: loop body
LE: loop exit
PB: predicated region body
PF: predicated region fallthrough
CT: control target
= control target key end

     0   :  { %10 = vsyncpa [#allocation6], 0  ;;  %s2047_s0 = inlined_call_operand.hbm [shape: f32[5,686], index: 0, kind: input, shape index: {}]   ;;  %s2048_s1 = inlined_call_operand.hbm [shape: f32[8,37], index: 1, kind: input, shape index: {}]   ;;  %s2049_s2 = inlined_call_operand.hbm [shape: f32[8,73], index: 2, kind: input, shape index: {}]   ;;  %s2050_s3 = inlined_call_operand.hbm [shape: f32[8,648], index: 3, kind: output, shape index: {0}]   ;;  %s2051_s4 = inlined_call_operand.hbm [shape: f32[8,648], index: 4, kind: output, shape index: {1}]  }
   0x1   :  { %11 = vsyncpa [#allocation9], 0 }
   0x2   :  { %12 = vsyncpa [#allocation7], 0 }
   0x3   :  { %13 = vsyncpa [#allocation13], 0  ;;  %s1625_s15 = smov [#allocation8]   ;;  %s1626_s17 = smov [#allocation5]  }
   0x4   :  { %s30_s16 = sshll.u32 %s1625_s15, 4  ;;  %s20_s18 = sshll.u32 %s1626_s17, 4  ;;  %s31_s16 = int_to_ptr.vmem [resolvable:$true] %s30_s16  ;;  %s21_s18 = int_to_ptr.vmem [resolvable:$true] %s20_s18 }
   0x5   :  { %s1525_s19 = scalar_lea.vmem %s31_s16, 128  ;;  %p1530_p1 = scmp.lt.s32.totalorder %s31_s16, %s31_s16 }
   0x6   :  { %p1526_p0 = scmp.ne.s32.totalorder %s31_s16, %s1525_s19  ;;  %p1531_p2 = scmp.lt.s32.totalorder %s1525_s19, %s1525_s19 }
   0x8   :  { %p1532_p3 = por %p1531_p2, %p1530_p1 }
   0xa   :  { %p1533_p4 = pnand %p1532_p3, %p1526_p0 }
   0xc   :  { %1536 = shalt.err (!%p1533_p4)
}
   0xd   :  { %33 = dma.hbm_to_vmem [thread:$0]  %s2048_s1, 128, %s31_s16, [#allocation9]  }
   0xe   :  { %s1545_s22 = scalar_lea.vmem %s21_s18, 768  ;;  %p1550_p6 = scmp.lt.s32.totalorder %s21_s18, %s21_s18 }
   0xf   :  { %p1546_p5 = scmp.ne.s32.totalorder %s21_s18, %s1545_s22  ;;  %p1551_p7 = scmp.lt.s32.totalorder %s1545_s22, %s1545_s22 }
  0x11   :  { %p1552_p8 = por %p1551_p7, %p1550_p6 }
  0x13   :  { %p1553_p9 = pnand %p1552_p8, %p1546_p5 }
  0x15   :  { %1556 = shalt.err (!%p1553_p9)
}
  0x16   :  { %23 = dma.hbm_to_vmem [thread:$0]  %s2047_s0, 768, %s21_s18, [#allocation6]  }
  0x17   :  { %s1627_s25 = smov [#allocation10]  }
  0x18   :  { %s40_s26 = sshll.u32 %s1627_s25, 4  ;;  %s41_s26 = int_to_ptr.vmem [resolvable:$true] %s40_s26 }
  0x19   :  { %s1565_s27 = scalar_lea.vmem %s41_s26, 128  ;;  %p1570_p11 = scmp.lt.s32.totalorder %s41_s26, %s41_s26 }
  0x1a   :  { %p1566_p10 = scmp.ne.s32.totalorder %s41_s26, %s1565_s27  ;;  %p1571_p12 = scmp.lt.s32.totalorder %s1565_s27, %s1565_s27 }
  0x1c   :  { %p1572_p13 = por %p1571_p12, %p1570_p11 }
  0x1e   :  { %p1573_p0 = pnand %p1572_p13, %p1566_p10 }
  0x20   :  { %1576 = shalt.err (!%p1573_p0)
}
  0x21   :  { %43 = dma.hbm_to_vmem [thread:$0]  %s2049_s2, 128, %s41_s26, [#allocation9]  }
  0x22   :  { %1617 = dma.done.wait [#allocation6], 768  }
  0x23   :  { %1618 = vsyncadd [#allocation6], 4294966528 }
  0x24   :  { %1619 = dma.done.wait [#allocation9], 256  }
  0x25   :  { %1620 = vsyncadd [#allocation9], 4294967040  ;;  %v386_v0 = vld [vmem:[#allocation5 + $0x8] sm:$0xf]  ;;  %v385_v1 = vld [vmem:[#allocation5] sm:$0xf] }
  0x26   :  { %s1628_s0 = smov 90   ;;  %v387_v2 = vld [vmem:[#allocation5 + $0x10] sm:$0xf]  ;;  %v296_v3 = vld [vmem:[#allocation5 + $0x8] sm:$0xf]  ;;  %s1629_s29 = smov 92  }
  0x27   :  { %399 = vrot.lane.b32.xlu0 %v386_v0, %s1628_s0  ;;  %397 = vrot.lane.b32.xlu1 %v385_v1, %s1628_s0  ;;  %v338_v4 = vld [vmem:[#allocation5 + $0x8] sm:$0xf]  ;;  %v297_v6 = vld [vmem:[#allocation5 + $0x10] sm:$0xf]  ;;  %s1630_s2 = smov 91   ;;  %s1631_s30 = smov 109  }
  0x28   :  { %v350_v5 = vrot.slane %v338_v4, 4  ;;  %v339_v7 = vld [vmem:[#allocation5 + $0x10] sm:$0xf]  ;;  %v388_v9 = vld [vmem:[#allocation5 + $0x18] sm:$0xf]  ;;  %s1632_s5 = smov 108  }
  0x29   :  { %v351_v8 = vrot.slane %v339_v7, 4  ;;  %v389_v10 = vld [vmem:[#allocation5 + $0x20] sm:$0xf]  ;;  %v206_v14 = vld [vmem:[#allocation5 + $0x8] sm:$0xf]  ;;  %s1633_s6 = smov 126  }
  0x2a   :  { %v295_v11 = vld [vmem:[#allocation5] sm:$0xf]  ;;  %v248_v15 = vld [vmem:[#allocation5 + $0x8] sm:$0xf]  ;;  %v207_v17 = vld [vmem:[#allocation5 + $0x10] sm:$0xf] }
  0x2b   :  { %401 = vrot.lane.b32.xlu0 %v387_v2, %s1628_s0  ;;  %309 = vrot.lane.b32.xlu1 %v296_v3, %s1629_s29  ;;  %v337_v12 = vld [vmem:[#allocation5] sm:$0xf]  ;;  %v260_v16 = vrot.slane %v248_v15, 4  ;;  %v249_v18 = vld [vmem:[#allocation5 + $0x10] sm:$0xf]  ;;  %s1634_s7 = smov 110  }
  0x2c   :  { %v349_v13 = vrot.slane %v337_v12, 4  ;;  %v261_v19 = vrot.slane %v249_v18, 4  ;;  %v298_v20 = vld [vmem:[#allocation5 + $0x18] sm:$0xf]  ;;  %v299_v23 = vld [vmem:[#allocation5 + $0x20] sm:$0xf] }
  0x2d   :  { %v340_v21 = vld [vmem:[#allocation5 + $0x18] sm:$0xf]  ;;  %v341_v24 = vld [vmem:[#allocation5 + $0x20] sm:$0xf]  ;;  %v116_v29 = vld [vmem:[#allocation5 + $0x8] sm:$0xf] }
  0x2e   :  { %v352_v22 = vrot.slane %v340_v21, 4  ;;  %v353_v25 = vrot.slane %v341_v24, 4  ;;  %v205_v26 = vld [vmem:[#allocation5] sm:$0xf]  ;;  %v158_v30 = vld [vmem:[#allocation5 + $0x8] sm:$0xf] }
  0x2f   :  { %311 = vrot.lane.b32.xlu0 %v297_v6, %s1629_s29  ;;  %357 = vrot.lane.b32.xlu1 %v350_v5, %s1630_s2  ;;  %v247_v27 = vld [vmem:[#allocation5] sm:$0xf]  ;;  %v170_v31 = vrot.slane %v158_v30, 4  ;;  %v117_v32 = vld [vmem:[#allocation5 + $0x10] sm:$0xf]  ;;  %s1635_s8 = smov 127  }
  0x30   :  { %v259_v28 = vrot.slane %v247_v27, 4  ;;  %v159_v33 = vld [vmem:[#allocation5 + $0x10] sm:$0xf]  ;;  %v208_v35 = vld [vmem:[#allocation5 + $0x18] sm:$0xf]  ;;  %vm64_vm0 = vcmask 60416  }
  0x31   :  { %v171_v34 = vrot.slane %v159_v33, 4  ;;  %v250_v36 = vld [vmem:[#allocation5 + $0x18] sm:$0xf]  ;;  %v209_v38 = vld [vmem:[#allocation5 + $0x20] sm:$0xf]  ;;  %v1636_v63 = vmov 0.0  }
  0x32   :  { %v262_v37 = vrot.slane %v250_v36, 4  ;;  %v251_v39 = vld [vmem:[#allocation5 + $0x20] sm:$0xf]  ;;  %v54_v40 = vld [vmem:[#allocation5 + $0x8] sm:$0xf]  ;;  %554 = vmatprep.mubr.f32.mxu0 %v1636_v63  ;;  %625 = vmatprep.mubr.f32.mxu1 %v1636_v63  ;;  %v1637_v15 = vmov 36  }
  0x33   :  { %359 = vrot.lane.b32.xlu0 %v351_v8, %s1630_s2  ;;  %403 = vrot.lane.b32.xlu1 %v388_v9, %s1628_s0  ;;  %v263_v41 = vrot.slane %v251_v39, 4  ;;  %60 = vst [vmem:[#allocation2 + $0x8] sm:$0xf] %v54_v40  ;;  %v115_v42 = vld [vmem:[#allocation5] sm:$0xf]  ;;  %vm409_vm1 = vcmask 736256  }
  0x34   :  { %v157_v43 = vld [vmem:[#allocation5] sm:$0xf]  ;;  %v67_v44 = vld [vmem:[#allocation5 + $0x8] sm:$0xf]  ;;  %v68_v47 = vld [vmem:[#allocation5 + $0x10] sm:$0xf]  ;;  %1511 = vset.pattern.permute.xlu0 %v1637_v15 }
  0x35   :  { %v169_v45 = vrot.slane %v157_v43, 4  ;;  %v79_v46 = vrot.slane %v67_v44, 4  ;;  %v53_v48 = vld [vmem:[#allocation5] sm:$0xf]  ;;  %v80_v49 = vrot.slane %v68_v47, 4  ;;  %vm319_vm2 = vcmask 752640  }
  0x36   :  { %59 = vst [vmem:[#allocation2] sm:$0xf] %v53_v48  ;;  %v118_v50 = vld [vmem:[#allocation5 + $0x18] sm:$0xf]  ;;  %v55_v53 = vld [vmem:[#allocation5 + $0x10] sm:$0xf] }
  0x37   :  { %405 = vrot.lane.b32.xlu0 %v389_v10, %s1628_s0  ;;  %307 = vrot.lane.b32.xlu1 %v295_v11, %s1629_s29  ;;  %v160_v51 = vld [vmem:[#allocation5 + $0x18] sm:$0xf]  ;;  %61 = vst [vmem:[#allocation2 + $0x10] sm:$0xf] %v55_v53  ;;  %v119_v55 = vld [vmem:[#allocation5 + $0x20] sm:$0xf] }
  0x38   :  { %v56_v52 = vld [vmem:[#allocation5 + $0x18] sm:$0xf]  ;;  %v172_v54 = vrot.slane %v160_v51, 4  ;;  %v161_v56 = vld [vmem:[#allocation5 + $0x20] sm:$0xf]  ;;  %vm367_vm3 = vcmask 744448  }
  0x39   :  { %62 = vst [vmem:[#allocation2 + $0x18] sm:$0xf] %v56_v52  ;;  %v66_v57 = vld [vmem:[#allocation5] sm:$0xf]  ;;  %v58_v58 = vld [vmem:[#allocation5 + $0x28] sm:$0xf] }
  0x3a   :  { %65 = vst.msk [vmem:[#allocation2 + $0x28] sm:$0xf] %vm64_vm0, %v58_v58  ;;  %v173_v59 = vrot.slane %v161_v56, 4  ;;  %v78_v60 = vrot.slane %v66_v57, 4  ;;  %v69_v61 = vld [vmem:[#allocation5 + $0x18] sm:$0xf] }
  0x3b   :  { %355 = vrot.lane.b32.xlu0 %v349_v13, %s1630_s2  ;;  %219 = vrot.lane.b32.xlu1 %v206_v14, %s1631_s30  ;;  %v70_v62 = vld [vmem:[#allocation5 + $0x20] sm:$0xf]  ;;  %v81_v0 = vrot.slane %v69_v61, 4  ;;  %v390_v2 = vld [vmem:[#allocation5 + $0x28] sm:$0xf]  ;;  %vm471_vm4 = vcmask 1043456  }
  0x3c   :  { %v82_v1 = vrot.slane %v70_v62, 4  ;;  %v300_v3 = vld [vmem:[#allocation5 + $0x28] sm:$0xf]  ;;  %v57_v8 = vld [vmem:[#allocation5 + $0x20] sm:$0xf]  ;;  %vm229_vm5 = vcmask 891904  }
  0x3d   :  { %v342_v4 = vld [vmem:[#allocation5 + $0x28] sm:$0xf]  ;;  %63 = vst [vmem:[#allocation2 + $0x20] sm:$0xf] %v57_v8  ;;  %vm277_vm6 = vcmask 883712   ;;  %vm139_vm7 = vcmask 1031168  }
  0x3e   :  { %v354_v5 = vrot.slane %v342_v4, 4  ;;  %v210_v6 = vld [vmem:[#allocation5 + $0x28] sm:$0xf]  ;;  %vm187_vm8 = vcmask 900096   ;;  %vm96_vm9 = vcmask 1039360   ;;  %vm468_vm10 = vcmask 293888  }
  0x3f   :  { %221 = vrot.lane.b32.xlu0 %v207_v17, %s1631_s30  ;;  %267 = vrot.lane.b32.xlu1 %v260_v16, %s1632_s5  ;;  %v252_v7 = vld [vmem:[#allocation5 + $0x28] sm:$0xf]  ;;  %v1728_v16 = vld [vmem:[#allocation8] sm:$0xff]  ;;  %vm113_vm11 = vcmask 64516   ;;  %vm758_vm12 = vcmask 154624   ;;  %s1638_s9 = smov 19  }
  0x40   :  { %v264_v9 = vrot.slane %v252_v7, 4  ;;  %v120_v10 = vld [vmem:[#allocation5 + $0x28] sm:$0xf]  ;;  %812 = vst.msk [vmem:[#allocation4] sm:$0xff] %vm758_vm12, %v1636_v63  ;;  %vm813_vm13 = vcmask 376024   ;;  %s1641_s10 = smov [#allocation11]  }
  0x41   :  { %v162_v11 = vld [vmem:[#allocation5 + $0x28] sm:$0xf]  ;;  %814 = vst.msk [vmem:[#allocation4 + $0x28] sm:$0xff] %vm813_vm13, %v1636_v63  ;;  %s1457_s11 = sshll.u32 %s1641_s10, 4  ;;  %s1458_s11 = int_to_ptr.vmem [resolvable:$true] %s1457_s11 }
  0x42   :  { %v71_v12 = vld [vmem:[#allocation5 + $0x28] sm:$0xf]  ;;  %v174_v13 = vrot.slane %v162_v11, 4  ;;  %s1577_s12 = scalar_lea.vmem %s1458_s11, 768  ;;  %p1582_p2 = scmp.lt.s32.totalorder %s1458_s11, %s1458_s11 }
  0x43   :  { %269 = vrot.lane.b32.xlu0 %v261_v19, %s1632_s5  ;;  %313 = vrot.lane.b32.xlu1 %v298_v20, %s1629_s29  ;;  %v83_v14 = vrot.slane %v71_v12, 4  ;;  %p1578_p1 = scmp.ne.s32.totalorder %s1458_s11, %s1577_s12  ;;  %p1583_p3 = scmp.lt.s32.totalorder %s1577_s12, %s1577_s12 }
  0x45   :  { %p1584_p4 = por %p1583_p3, %p1582_p2 }
  0x47   :  { %315 = vrot.lane.b32.xlu0 %v299_v23, %s1629_s29  ;;  %361 = vrot.lane.b32.xlu1 %v352_v22, %s1630_s2  ;;  %p1585_p5 = pnand %p1584_p4, %p1578_p1 }
  0x4b   :  { %363 = vrot.lane.b32.xlu0 %v353_v25, %s1630_s2  ;;  %217 = vrot.lane.b32.xlu1 %v205_v26, %s1631_s30 }
  0x4f   :  { %265 = vrot.lane.b32.xlu0 %v259_v28, %s1632_s5  ;;  %129 = vrot.lane.b32.xlu1 %v116_v29, %s1633_s6 }
  0x53   :  { %131 = vrot.lane.b32.xlu0 %v117_v32, %s1633_s6  ;;  %177 = vrot.lane.b32.xlu1 %v170_v31, %s1634_s7 }
  0x57   :  { %179 = vrot.lane.b32.xlu0 %v171_v34, %s1634_s7  ;;  %223 = vrot.lane.b32.xlu1 %v208_v35, %s1631_s30 }
  0x5b   :  { %225 = vrot.lane.b32.xlu0 %v209_v38, %s1631_s30  ;;  %271 = vrot.lane.b32.xlu1 %v262_v37, %s1632_s5 }
  0x5f   :  { %273 = vrot.lane.b32.xlu0 %v263_v41, %s1632_s5  ;;  %127 = vrot.lane.b32.xlu1 %v115_v42, %s1633_s6 }
  0x63   :  { %175 = vrot.lane.b32.xlu0 %v169_v45, %s1634_s7  ;;  %86 = vrot.lane.b32.xlu1 %v79_v46, %s1635_s8 }
  0x67   :  { %88 = vrot.lane.b32.xlu0 %v80_v49, %s1635_s8  ;;  %133 = vrot.lane.b32.xlu1 %v118_v50, %s1633_s6 }
  0x6b   :  { %135 = vrot.lane.b32.xlu0 %v119_v55, %s1633_s6  ;;  %181 = vrot.lane.b32.xlu1 %v172_v54, %s1634_s7 }
  0x6f   :  { %183 = vrot.lane.b32.xlu0 %v173_v59, %s1634_s7  ;;  %84 = vrot.lane.b32.xlu1 %v78_v60, %s1635_s8 }
  0x73   :  { %90 = vrot.lane.b32.xlu0 %v81_v0, %s1635_s8  ;;  %92 = vrot.lane.b32.xlu1 %v82_v1, %s1635_s8 }
  0x77   :  { %407 = vrot.lane.b32.xlu0 %v390_v2, %s1628_s0  ;;  %317 = vrot.lane.b32.xlu1 %v300_v3, %s1629_s29 }
  0x7b   :  { %365 = vrot.lane.b32.xlu0 %v354_v5, %s1630_s2  ;;  %227 = vrot.lane.b32.xlu1 %v210_v6, %s1631_s30 }
  0x7f   :  { %275 = vrot.lane.b32.xlu0 %v264_v9, %s1632_s5  ;;  %137 = vrot.lane.b32.xlu1 %v120_v10, %s1633_s6 }
  0x83   :  { %185 = vrot.lane.b32.xlu0 %v174_v13, %s1634_s7  ;;  %94 = vrot.lane.b32.xlu1 %v83_v14, %s1635_s8 }
  0x87   :  { %465 = vperm.xlu0 %1511, %v1728_v16  }
  0x99   :  { %v400_v17 = vpop.permute.xlu0 %399  ;;  %v398_v18 = vpop.permute.xlu1 %397 }
  0x9a   :  { %v410_v19 = vsel %vm409_vm1, %v398_v18, %v400_v17 }
  0x9b   :  { %421 = vst [vmem:[#allocation2 + $0xc0] sm:$0xf] %v410_v19 }
  0x9d   :  { %v402_v20 = vpop.permute.xlu0 %401  ;;  %v310_v21 = vpop.permute.xlu1 %309 }
  0x9e   :  { %v411_v22 = vsel %vm409_vm1, %v400_v17, %v402_v20 }
  0x9f   :  { %422 = vst [vmem:[#allocation2 + $0xc8] sm:$0xf] %v411_v22 }
  0xa1   :  { %v312_v23 = vpop.permute.xlu0 %311  ;;  %v358_v24 = vpop.permute.xlu1 %357 }
  0xa2   :  { %v321_v25 = vsel %vm319_vm2, %v310_v21, %v312_v23  ;;  %v452_v31 = vld [vmem:[#allocation2 + $0xc0] sm:$0xf] }
  0xa3   :  { %332 = vst [vmem:[#allocation2 + $0x98] sm:$0xf] %v321_v25 }
  0xa5   :  { %v360_v26 = vpop.permute.xlu0 %359  ;;  %v404_v27 = vpop.permute.xlu1 %403 }
  0xa6   :  { %v369_v28 = vsel %vm367_vm3, %v358_v24, %v360_v26  ;;  %v412_v29 = vsel %vm409_vm1, %v402_v20, %v404_v27  ;;  %v453_v30 = vld [vmem:[#allocation2 + $0xc8] sm:$0xf] }
  0xa7   :  { %380 = vst [vmem:[#allocation2 + $0x98] sm:$0xf0] %v369_v28  ;;  %423 = vst [vmem:[#allocation2 + $0xd0] sm:$0xf] %v412_v29  ;;  %1481 = vmatprep.subr.msk.mxu0 %vm471_vm4, %v453_v30 }
  0xa8   :  { %1482 = vmatpush1.msk.msra.mxu0 %vm471_vm4, %v452_v31 }
  0xa9   :  { %v1738_v32 = vpop.permute.xlu0 %405  ;;  %v308_v33 = vpop.permute.xlu1 %307 }
  0xaa   :  { %v413_v34 = vsel %vm409_vm1, %v404_v27, %v1738_v32  ;;  %v320_v35 = vsel %vm319_vm2, %v308_v33, %v310_v21 }
  0xab   :  { %424 = vst [vmem:[#allocation2 + $0xd8] sm:$0xf] %v413_v34  ;;  %331 = vst [vmem:[#allocation2 + $0x90] sm:$0xf] %v320_v35 }
  0xad   :  { %v356_v36 = vpop.permute.xlu0 %355  ;;  %v220_v37 = vpop.permute.xlu1 %219 }
  0xae   :  { %v368_v38 = vsel %vm367_vm3, %v356_v36, %v358_v24  ;;  %v447_v39 = vld [vmem:[#allocation2 + $0x98] sm:$0xff]  ;;  %v454_v44 = vld [vmem:[#allocation2 + $0xd0] sm:$0xf] }
  0xaf   :  { %379 = vst [vmem:[#allocation2 + $0x90] sm:$0xf0] %v368_v38  ;;  %514 = vmatprep.subr.mxu0 %v447_v39 }
  0xb1   :  { %v222_v40 = vpop.permute.xlu0 %221  ;;  %v268_v41 = vpop.permute.xlu1 %267 }
  0xb2   :  { %v231_v42 = vsel %vm229_vm5, %v220_v37, %v222_v40  ;;  %v455_v43 = vld [vmem:[#allocation2 + $0xd8] sm:$0xf] }
  0xb3   :  { %242 = vst [vmem:[#allocation2 + $0x68] sm:$0xf] %v231_v42  ;;  %1484 = vmatprep.subr.msk.mxu1 %vm471_vm4, %v455_v43 }
  0xb4   :  { %1485 = vmatpush1.msk.msra.mxu1 %vm471_vm4, %v454_v44 }
  0xb5   :  { %v270_v45 = vpop.permute.xlu0 %269  ;;  %v314_v46 = vpop.permute.xlu1 %313 }
  0xb6   :  { %v279_v47 = vsel %vm277_vm6, %v268_v41, %v270_v45  ;;  %v322_v48 = vsel %vm319_vm2, %v312_v23, %v314_v46  ;;  %v446_v49 = vld [vmem:[#allocation2 + $0x90] sm:$0xff] }
  0xb7   :  { %290 = vst [vmem:[#allocation2 + $0x68] sm:$0xf0] %v279_v47  ;;  %333 = vst [vmem:[#allocation2 + $0xa0] sm:$0xf] %v322_v48  ;;  %515 = vmatpush1.msra.mxu0 %v446_v49 }
  0xb9   :  { %v1749_v50 = vpop.permute.xlu0 %315  ;;  %v362_v51 = vpop.permute.xlu1 %361 }
  0xba   :  { %v323_v52 = vsel %vm319_vm2, %v314_v46, %v1749_v50  ;;  %v370_v53 = vsel %vm367_vm3, %v360_v26, %v362_v51 }
  0xbb   :  { %334 = vst [vmem:[#allocation2 + $0xa8] sm:$0xf] %v323_v52  ;;  %381 = vst [vmem:[#allocation2 + $0xa0] sm:$0xf0] %v370_v53 }
  0xbd   :  { %v1754_v54 = vpop.permute.xlu0 %363  ;;  %v218_v55 = vpop.permute.xlu1 %217 }
  0xbe   :  { %v371_v56 = vsel %vm367_vm3, %v362_v51, %v1754_v54  ;;  %v230_v57 = vsel %vm229_vm5, %v218_v55, %v220_v37  ;;  %v441_v58 = vld [vmem:[#allocation2 + $0x68] sm:$0xff] }
  0xbf   :  { %382 = vst [vmem:[#allocation2 + $0xa8] sm:$0xf0] %v371_v56  ;;  %241 = vst [vmem:[#allocation2 + $0x60] sm:$0xf] %v230_v57  ;;  %516 = vmatprep.subr.mxu0 %v441_v58 }
  0xc1   :  { %v266_v59 = vpop.permute.xlu0 %265  ;;  %v130_v60 = vpop.permute.xlu1 %129 }
  0xc2   :  { %v278_v61 = vsel %vm277_vm6, %v266_v59, %v268_v41  ;;  %v448_v3 = vld [vmem:[#allocation2 + $0xa0] sm:$0xff] }
  0xc3   :  { %289 = vst [vmem:[#allocation2 + $0x60] sm:$0xf0] %v278_v61 }
  0xc5   :  { %v132_v62 = vpop.permute.xlu0 %131  ;;  %v178_v0 = vpop.permute.xlu1 %177 }
  0xc6   :  { %v141_v1 = vsel %vm139_vm7, %v130_v60, %v132_v62  ;;  %v449_v2 = vld [vmem:[#allocation2 + $0xa8] sm:$0xff] }
  0xc7   :  { %152 = vst [vmem:[#allocation2 + $0x38] sm:$0xf] %v141_v1  ;;  %585 = vmatprep.subr.mxu1 %v449_v2 }
  0xc8   :  { %586 = vmatpush1.msra.mxu1 %v448_v3 }
  0xc9   :  { %v180_v4 = vpop.permute.xlu0 %179  ;;  %v224_v5 = vpop.permute.xlu1 %223 }
  0xca   :  { %v189_v6 = vsel %vm187_vm8, %v178_v0, %v180_v4  ;;  %v232_v7 = vsel %vm229_vm5, %v222_v40, %v224_v5  ;;  %v440_v8 = vld [vmem:[#allocation2 + $0x60] sm:$0xff] }
  0xcb   :  { %200 = vst [vmem:[#allocation2 + $0x38] sm:$0xf0] %v189_v6  ;;  %243 = vst [vmem:[#allocation2 + $0x70] sm:$0xf] %v232_v7  ;;  %517 = vmatpush1.msra.mxu0 %v440_v8 }
  0xcd   :  { %v1763_v9 = vpop.permute.xlu0 %225  ;;  %v272_v10 = vpop.permute.xlu1 %271 }
  0xce   :  { %v233_v11 = vsel %vm229_vm5, %v224_v5, %v1763_v9  ;;  %v280_v12 = vsel %vm277_vm6, %v270_v45, %v272_v10 }
  0xcf   :  { %244 = vst [vmem:[#allocation2 + $0x78] sm:$0xf] %v233_v11  ;;  %291 = vst [vmem:[#allocation2 + $0x70] sm:$0xf0] %v280_v12 }
  0xd1   :  { %v1768_v13 = vpop.permute.xlu0 %273  ;;  %v128_v14 = vpop.permute.xlu1 %127 }
  0xd2   :  { %v281_v15 = vsel %vm277_vm6, %v272_v10, %v1768_v13  ;;  %v140_v17 = vsel %vm139_vm7, %v128_v14, %v130_v60  ;;  %v435_v18 = vld [vmem:[#allocation2 + $0x38] sm:$0xff] }
  0xd3   :  { %292 = vst [vmem:[#allocation2 + $0x78] sm:$0xf0] %v281_v15  ;;  %151 = vst [vmem:[#allocation2 + $0x30] sm:$0xf] %v140_v17  ;;  %518 = vmatprep.subr.mxu0 %v435_v18 }
  0xd5   :  { %v176_v19 = vpop.permute.xlu0 %175  ;;  %v87_v20 = vpop.permute.xlu1 %86 }
  0xd6   :  { %v188_v21 = vsel %vm187_vm8, %v176_v19, %v178_v0  ;;  %v442_v27 = vld [vmem:[#allocation2 + $0x70] sm:$0xff] }
  0xd7   :  { %199 = vst [vmem:[#allocation2 + $0x30] sm:$0xf0] %v188_v21 }
  0xd9   :  { %v89_v22 = vpop.permute.xlu0 %88  ;;  %v134_v23 = vpop.permute.xlu1 %133 }
  0xda   :  { %v98_v24 = vsel %vm96_vm9, %v87_v20, %v89_v22  ;;  %v142_v25 = vsel %vm139_vm7, %v132_v62, %v134_v23  ;;  %v443_v26 = vld [vmem:[#allocation2 + $0x78] sm:$0xff] }
  0xdb   :  { %109 = vst [vmem:[#allocation2 + $0x8] sm:$0xf0] %v98_v24  ;;  %153 = vst [vmem:[#allocation2 + $0x40] sm:$0xf] %v142_v25  ;;  %587 = vmatprep.subr.mxu1 %v443_v26 }
  0xdc   :  { %588 = vmatpush1.msra.mxu1 %v442_v27 }
  0xdd   :  { %v136_v28 = vpop.permute.xlu0 %135  ;;  %v182_v29 = vpop.permute.xlu1 %181 }
  0xde   :  { %v143_v30 = vsel %vm139_vm7, %v134_v23, %v136_v28  ;;  %v190_v31 = vsel %vm187_vm8, %v180_v4, %v182_v29  ;;  %v434_v33 = vld [vmem:[#allocation2 + $0x30] sm:$0xff] }
  0xdf   :  { %154 = vst [vmem:[#allocation2 + $0x48] sm:$0xf] %v143_v30  ;;  %201 = vst [vmem:[#allocation2 + $0x40] sm:$0xf0] %v190_v31  ;;  %519 = vmatpush1.msra.mxu0 %v434_v33  ;;  %v710_v33 = vlaneseq }
  0xe0   :  { %v459_v30 = vld [vmem:[#allocation5 + $0x4] ss:$8 sm:$0xf] }
  0xe1   :  { %v184_v34 = vpop.permute.xlu0 %183  ;;  %v85_v35 = vpop.permute.xlu1 %84  ;;  %v460_v31 = vld [vmem:[#allocation5 + $0x4] ss:$8 sm:$0x30] }
  0xe2   :  { %v191_v36 = vsel %vm187_vm8, %v182_v29, %v184_v34  ;;  %v97_v37 = vsel %vm96_vm9, %v85_v35, %v87_v20  ;;  %v429_v38 = vld [vmem:[#allocation2 + $0x8] sm:$0xff]  ;;  %v1639_v29 = vmov 72   ;;  %v711_v35 = vshrl.u32 %v710_v33, 7 }
  0xe3   :  { %202 = vst [vmem:[#allocation2 + $0x48] sm:$0xf0] %v191_v36  ;;  %108 = vst [vmem:[#allocation2] sm:$0xf0] %v97_v37  ;;  %520 = vmatprep.subr.mxu0 %v429_v38  ;;  %1512 = vset.pattern.permute.xlu0 %v1639_v29  ;;  %v1640_v37 = vmov 0  }
  0xe4   :  { %v712_v36 = vsub.s32 0, %v711_v35 }
  0xe5   :  { %v91_v39 = vpop.permute.xlu0 %90  ;;  %v93_v40 = vpop.permute.xlu1 %92 }
  0xe6   :  { %v99_v41 = vsel %vm96_vm9, %v89_v22, %v91_v39  ;;  %v100_v42 = vsel %vm96_vm9, %v91_v39, %v93_v40  ;;  %v436_v49 = vld [vmem:[#allocation2 + $0x40] sm:$0xff] }
  0xe7   :  { %110 = vst [vmem:[#allocation2 + $0x10] sm:$0xf0] %v99_v41  ;;  %111 = vst [vmem:[#allocation2 + $0x18] sm:$0xf0] %v100_v42  ;;  %v720_v41 = vsub.s32 2, %v711_v35 }
  0xe9   :  { %v408_v43 = vpop.permute.xlu0 %407  ;;  %v318_v44 = vpop.permute.xlu1 %317 }
  0xea   :  { %v414_v45 = vsel %vm409_vm1, %v1738_v32, %v408_v43  ;;  %426 = vst.msk [vmem:[#allocation2 + $0xe8] sm:$0xf] %vm64_vm0, %v408_v43  ;;  %v324_v46 = vsel %vm319_vm2, %v1749_v50, %v318_v44  ;;  %336 = vst.msk [vmem:[#allocation2 + $0xb8] sm:$0xf] %vm64_vm0, %v318_v44  ;;  %v428_v47 = vld [vmem:[#allocation2] sm:$0xff]  ;;  %v437_v48 = vld [vmem:[#allocation2 + $0x48] sm:$0xff] }
  0xeb   :  { %425 = vst [vmem:[#allocation2 + $0xe0] sm:$0xf] %v414_v45  ;;  %335 = vst [vmem:[#allocation2 + $0xb0] sm:$0xf] %v324_v46  ;;  %521 = vmatpush1.msra.mxu0 %v428_v47  ;;  %589 = vmatprep.subr.mxu1 %v437_v48  ;;  %v724_v43 = vsub.s32 3, %v711_v35 }
  0xec   :  { %1483 = vmatmul.mubr.msk.f32.vlgmr.msra.gmra.mxu0 %vm468_vm10, %v1728_v16  ;;  %590 = vmatpush1.msra.mxu1 %v436_v49 }
  0xed   :  { %v366_v32 = vpop.permute.xlu0 %365  ;;  %v228_v51 = vpop.permute.xlu1 %227  ;;  %696 = vmatprep.mubr.f32.mxu0 %v1636_v63 }
  0xee   :  { %v372_v50 = vsel %vm367_vm3, %v1754_v54, %v366_v32  ;;  %384 = vst.msk [vmem:[#allocation2 + $0xb8] sm:$0xf0] %vm113_vm11, %v366_v32  ;;  %v234_v52 = vsel %vm229_vm5, %v1763_v9, %v228_v51  ;;  %v431_v53 = vld [vmem:[#allocation2 + $0x18] sm:$0xff]  ;;  %v430_v55 = vld [vmem:[#allocation2 + $0x10] sm:$0xff] }
  0xef   :  { %246 = vst.msk [vmem:[#allocation2 + $0x88] sm:$0xf] %vm64_vm0, %v228_v51  ;;  %383 = vst [vmem:[#allocation2 + $0xb0] sm:$0xf0] %v372_v50  ;;  %591 = vmatprep.subr.mxu1 %v431_v53 }
  0xf0   :  { %245 = vst [vmem:[#allocation2 + $0x80] sm:$0xf] %v234_v52  ;;  %592 = vmatpush1.msra.mxu1 %v430_v55 }
  0xf1   :  { %v276_v56 = vpop.permute.xlu0 %275  ;;  %v138_v57 = vpop.permute.xlu1 %137  ;;  %1486 = vmatmul.mubr.msk.f32.vlgmr.msra.gmra.mxu1 %vm468_vm10, %v1728_v16  ;;  %v457_v58 = vld [vmem:[#allocation2 + $0xe8] sm:$0xf] }
  0xf2   :  { %v282_v54 = vsel %vm277_vm6, %v1768_v13, %v276_v56  ;;  %294 = vst.msk [vmem:[#allocation2 + $0x88] sm:$0xf0] %vm113_vm11, %v276_v56  ;;  %v144_v59 = vsel %vm139_vm7, %v136_v28, %v138_v57  ;;  %1487 = vmatprep.subr.msk.mxu0 %vm471_vm4, %v457_v58  ;;  %v456_v60 = vld [vmem:[#allocation2 + $0xe0] sm:$0xf]  ;;  %1290 = vmatprep.mubr.f32.mxu1 %v1636_v63  ;;  %v728_v58 = vsub.s32 4, %v711_v35 }
  0xf3   :  { %156 = vst.msk [vmem:[#allocation2 + $0x58] sm:$0xf] %vm64_vm0, %v138_v57  ;;  %293 = vst [vmem:[#allocation2 + $0x80] sm:$0xf0] %v282_v54  ;;  %1488 = vmatpush1.msk.msra.mxu0 %vm471_vm4, %v456_v60  ;;  %vm815_vm0 = vcmask 1047704   ;;  %v732_v54 = vsub.s32 5, %v711_v35 }
  0xf4   :  { %155 = vst [vmem:[#allocation2 + $0x50] sm:$0xf] %v144_v59 }
  0xf5   :  { %v186_v61 = vpop.permute.xlu0 %185  ;;  %v95_v62 = vpop.permute.xlu1 %94  ;;  %v451_v0 = vld [vmem:[#allocation2 + $0xb8] sm:$0xff] }
  0xf6   :  { %v192_v1 = vsel %vm187_vm8, %v184_v34, %v186_v61  ;;  %204 = vst.msk [vmem:[#allocation2 + $0x58] sm:$0xf0] %vm113_vm11, %v186_v61  ;;  %v101_v2 = vsel %vm96_vm9, %v93_v40, %v95_v62  ;;  %114 = vst.msk [vmem:[#allocation2 + $0x28] sm:$0xf0] %vm113_vm11, %v95_v62  ;;  %656 = vmatprep.subr.mxu0 %v451_v0  ;;  %v450_v3 = vld [vmem:[#allocation2 + $0xb0] sm:$0xff]  ;;  %v461_v34 = vor.u32 %v460_v31, %v459_v30 }
  0xf7   :  { %203 = vst [vmem:[#allocation2 + $0x50] sm:$0xf0] %v192_v1  ;;  %112 = vst [vmem:[#allocation2 + $0x20] sm:$0xf0] %v101_v2  ;;  %657 = vmatpush1.msra.mxu0 %v450_v3  ;;  %v716_v40 = vsub.s32 1, %v711_v35 }
  0xf8   :  { %vm462_vm14 = vcmp.gt.f32.partialorder %v461_v34, 0.0 }
  0xf9   :  { %v445_v4 = vld [vmem:[#allocation2 + $0x88] sm:$0xff]  ;;  %v709_v38 = vsel %vm462_vm14, 1, %v1640_v37 }
  0xfa   :  { %658 = vmatprep.subr.mxu0 %v445_v4  ;;  %v444_v5 = vld [vmem:[#allocation2 + $0x80] sm:$0xff]  ;;  %v713_v39 = vrot.slane %v709_v38, %v712_v36  ;;  %v1817_v42 = vrot.slane %v709_v38, %v716_v40  ;;  %v1819_v45 = vrot.slane %v709_v38, %v720_v41  ;;  %v1825_v47 = vrot.slane %v709_v38, %v724_v43 }
  0xfb   :  { %659 = vmatpush1.msra.mxu0 %v444_v5  ;;  %v1863_v59 = vrot.slane %v709_v38, %v728_v58  ;;  %v733_v60 = vrot.slane %v709_v38, %v732_v54  ;;  %v1946_v5 = vld [vmem:[#allocation10] sm:$0xff] }
  0xfc   :  { %vm734_vm15 = vcmp.eq.s32.totalorder %v713_v39, 1  ;;  %vm735_vm4 = vcmp.eq.s32.totalorder %v1817_v42, 1  ;;  %vm737_vm11 = vcmp.eq.s32.totalorder %v1825_v47, 1 }
  0xfd   :  { %v439_v6 = vld [vmem:[#allocation2 + $0x58] sm:$0xff]  ;;  %v433_v7 = vld [vmem:[#allocation2 + $0x28] sm:$0xff]  ;;  %vm738_vm13 = vcmp.eq.s32.totalorder %v1863_v59, 1  ;;  %vm739_vm14 = vcmp.eq.s32.totalorder %v733_v60, 1 }
  0xfe   :  { %660 = vmatprep.subr.mxu0 %v439_v6  ;;  %v438_v8 = vld [vmem:[#allocation2 + $0x50] sm:$0xff]  ;;  %v432_v9 = vld [vmem:[#allocation2 + $0x20] sm:$0xff] }
  0xff   :  { %661 = vmatpush1.msra.mxu0 %v438_v8 }
 0x100   :  { %662 = vmatprep.subr.mxu0 %v433_v7 }
 0x101   :  { %663 = vmatpush1.msra.mxu0 %v432_v9 }
 0x102   :  { %1489 = vmatmul.mubr.msk.f32.vlgmr.msra.gmra.mxu0 %vm468_vm10, %v1728_v16  ;;  %v466_v10 = vpop.permute.xlu0 %465  ;;  %vm736_vm10 = vcmp.eq.s32.totalorder %v1819_v45, 1 }
 0x103   :  { %1361 = vmatprep.mubr.f32.mxu0 %v1636_v63 }
 0x1ac   :  { %v556_v11 = vpop.f32.mrf.mxu0 }
 0x1ad   :  { %v557_v12 = vadd.f32 %v556_v11, %v466_v10 }
 0x1ae   :  { %v558_v13 = vpop.f32.mrf.mxu0 }
 0x1af   :  { %v703_v14 = vmax.f32 %v557_v12, 0.0  ;;  %v559_v15 = vadd.f32 %v558_v13, %v466_v10 }
 0x1b1   :  { %v627_v17 = vpop.f32.mrf.mxu1  ;;  %746 = vrot.lane.b32.xlu1 %v703_v14, %s1638_s9  ;;  %v704_v19 = vmax.f32 %v559_v15, 0.0 }
 0x1b2   :  { %v628_v18 = vadd.f32 %v627_v17, %v466_v10 }
 0x1b3   :  { %v629_v20 = vpop.f32.mrf.mxu1 }
 0x1b4   :  { %v705_v21 = vmax.f32 %v628_v18, 0.0  ;;  %v630_v16 = vadd.f32 %v629_v20, %v466_v10 }
 0x1b5   :  { %748 = vrot.lane.b32.xlu1 %v704_v19, %s1638_s9 }
 0x1b6   :  { %v706_v22 = vmax.f32 %v630_v16, 0.0  ;;  %750 = vrot.lane.b32.xlu0 %v705_v21, %s1638_s9 }
 0x1b9   :  { %752 = vrot.lane.b32.xlu1 %v706_v22, %s1638_s9 }
 0x1c2   :  { %v698_v23 = vpop.f32.mrf.mxu0 }
 0x1c3   :  { %v699_v24 = vadd.f32 %v698_v23, %v466_v10 }
 0x1c4   :  { %v700_v25 = vpop.f32.mrf.mxu0 }
 0x1c5   :  { %v707_v26 = vmax.f32 %v699_v24, 0.0  ;;  %v701_v27 = vadd.f32 %v700_v25, %v466_v10 }
 0x1c7   :  { %v708_v28 = vmax.f32 %v701_v27, 0.0  ;;  %754 = vrot.lane.b32.xlu0 %v707_v26, %s1638_s9 }
 0x1c9   :  { %756 = vrot.lane.b32.xlu1 %v708_v28, %s1638_s9 }
 0x223   :  { %v747_v44 = vpop.permute.xlu1 %746 }
 0x224   :  { %v1821_v46 = vsel %vm734_vm15, %v747_v44, 0.0  ;;  %vm821_vm15 = vcmask 220160  }
 0x225   :  { %816 = vst.msk [vmem:[#allocation4] sm:$0xff] %vm815_vm0, %v1821_v46  ;;  %vm810_vm0 = vcmask 64512  }
 0x227   :  { %v749_v48 = vpop.permute.xlu1 %748 }
 0x228   :  { %v1829_v49 = vsel %vm758_vm12, %v747_v44, %v749_v48  ;;  %v751_v32 = vpop.permute.xlu0 %750 }
 0x229   :  { %v1834_v51 = vsel %vm735_vm4, %v1829_v49, 0.0  ;;  %v1837_v50 = vsel %vm758_vm12, %v749_v48, %v751_v32 }
 0x22a   :  { %v1842_v52 = vsel %vm736_vm10, %v1837_v50, 0.0 }
 0x22b   :  { %v753_v53 = vpop.permute.xlu1 %752 }
 0x22c   :  { %v1846_v55 = vsel %vm758_vm12, %v751_v32, %v753_v53  ;;  %v1848_v56 = vld [vmem:[#allocation4] sm:$0xff] }
 0x22d   :  { %v1853_v57 = vsel %vm737_vm11, %v1846_v55, 0.0  ;;  %1134 = vrot.lane.b32.xlu0 %v1848_v56, %s1628_s0  ;;  %1093 = vrot.lane.b32.xlu1 %v1848_v56, %s1630_s2 }
 0x231   :  { %1052 = vrot.lane.b32.xlu0 %v1848_v56, %s1629_s29  ;;  %1011 = vrot.lane.b32.xlu1 %v1848_v56, %s1632_s5 }
 0x235   :  { %970 = vrot.lane.b32.xlu0 %v1848_v56, %s1631_s30  ;;  %929 = vrot.lane.b32.xlu1 %v1848_v56, %s1634_s7 }
 0x239   :  { %v755_v61 = vpop.permute.xlu0 %754  ;;  %888 = vrot.lane.b32.xlu0 %v1848_v56, %s1633_s6  ;;  %847 = vrot.lane.b32.xlu1 %v1848_v56, %s1635_s8 }
 0x23a   :  { %v1875_v62 = vsel %vm758_vm12, %v753_v53, %v755_v61 }
 0x23b   :  { %v774_v0 = vsel %vm738_vm13, %v1875_v62, 0.0  ;;  %v757_v1 = vpop.permute.xlu1 %756 }
 0x23c   :  { %v763_v2 = vsel %vm758_vm12, %v755_v61, %v757_v1  ;;  %vm1223_vm12 = vcmask 588800  }
 0x23d   :  { %v775_v3 = vsel %vm739_vm14, %v763_v2, 0.0  ;;  %1138 = vrot.lane.b32.xlu1 %v1842_v52, %s1628_s0  ;;  %1136 = vrot.lane.b32.xlu0 %v1834_v51, %s1628_s0 }
 0x23e   :  { %822 = vst.msk [vmem:[#allocation4 + $0x28] sm:$0xff] %vm821_vm15, %v775_v3 }
 0x241   :  { %1097 = vrot.lane.b32.xlu0 %v1842_v52, %s1630_s2  ;;  %1095 = vrot.lane.b32.xlu1 %v1834_v51, %s1630_s2 }
 0x245   :  { %1056 = vrot.lane.b32.xlu1 %v1842_v52, %s1629_s29  ;;  %1054 = vrot.lane.b32.xlu0 %v1834_v51, %s1629_s29  ;;  %v1127_v4 = vld [vmem:[#allocation4 + $0x28] sm:$0xff] }
 0x246   :  { %834 = vst.msk [vmem:[#allocation3 + $0x28] sm:$0xff] %vm810_vm0, %v1127_v4 }
 0x249   :  { %1015 = vrot.lane.b32.xlu0 %v1842_v52, %s1632_s5  ;;  %1013 = vrot.lane.b32.xlu1 %v1834_v51, %s1632_s5 }
 0x24d   :  { %974 = vrot.lane.b32.xlu1 %v1842_v52, %s1631_s30  ;;  %972 = vrot.lane.b32.xlu0 %v1834_v51, %s1631_s30  ;;  %v1169_v47 = vld [vmem:[#allocation3 + $0x28] sm:$0xff] }
 0x251   :  { %933 = vrot.lane.b32.xlu0 %v1842_v52, %s1634_s7  ;;  %931 = vrot.lane.b32.xlu1 %v1834_v51, %s1634_s7 }
 0x255   :  { %892 = vrot.lane.b32.xlu1 %v1842_v52, %s1633_s6  ;;  %890 = vrot.lane.b32.xlu0 %v1834_v51, %s1633_s6 }
 0x259   :  { %851 = vrot.lane.b32.xlu0 %v1842_v52, %s1635_s8  ;;  %849 = vrot.lane.b32.xlu1 %v1834_v51, %s1635_s8 }
 0x25d   :  { %1140 = vrot.lane.b32.xlu0 %v1853_v57, %s1628_s0  ;;  %1099 = vrot.lane.b32.xlu1 %v1853_v57, %s1630_s2 }
 0x261   :  { %1058 = vrot.lane.b32.xlu0 %v1853_v57, %s1629_s29  ;;  %1017 = vrot.lane.b32.xlu1 %v1853_v57, %s1632_s5 }
 0x265   :  { %976 = vrot.lane.b32.xlu0 %v1853_v57, %s1631_s30  ;;  %935 = vrot.lane.b32.xlu1 %v1853_v57, %s1634_s7 }
 0x269   :  { %894 = vrot.lane.b32.xlu0 %v1853_v57, %s1633_s6  ;;  %853 = vrot.lane.b32.xlu1 %v1853_v57, %s1635_s8 }
 0x26d   :  { %1101 = vrot.lane.b32.xlu0 %v774_v0, %s1630_s2  ;;  %1142 = vrot.lane.b32.xlu1 %v774_v0, %s1628_s0 }
 0x271   :  { %1019 = vrot.lane.b32.xlu0 %v774_v0, %s1632_s5  ;;  %1060 = vrot.lane.b32.xlu1 %v774_v0, %s1629_s29 }
 0x275   :  { %937 = vrot.lane.b32.xlu0 %v774_v0, %s1634_s7  ;;  %978 = vrot.lane.b32.xlu1 %v774_v0, %s1631_s30 }
 0x279   :  { %896 = vrot.lane.b32.xlu1 %v774_v0, %s1633_s6  ;;  %1144 = vrot.lane.b32.xlu0 %v1127_v4, %s1628_s0 }
 0x27d   :  { %1103 = vrot.lane.b32.xlu1 %v1127_v4, %s1630_s2  ;;  %1062 = vrot.lane.b32.xlu0 %v1127_v4, %s1629_s29 }
 0x281   :  { %1021 = vrot.lane.b32.xlu1 %v1127_v4, %s1632_s5  ;;  %980 = vrot.lane.b32.xlu0 %v1127_v4, %s1631_s30 }
 0x285   :  { %939 = vrot.lane.b32.xlu1 %v1127_v4, %s1634_s7  ;;  %898 = vrot.lane.b32.xlu0 %v1127_v4, %s1633_s6 }
 0x289   :  { %855 = vrot.lane.b32.xlu0 %v774_v0, %s1635_s8  ;;  %857 = vrot.lane.b32.xlu1 %v1127_v4, %s1635_s8 }
 0x28d   :  { %1220 = vperm.xlu0 %1512, %v1946_v5   ;;  %782 = vrot.lane.b32.xlu1 %v1821_v46, %s1631_s30 }
 0x291   :  { %786 = vrot.lane.b32.xlu0 %v1842_v52, %s1631_s30  ;;  %784 = vrot.lane.b32.xlu1 %v1834_v51, %s1631_s30 }
 0x295   :  { %790 = vrot.lane.b32.xlu0 %v774_v0, %s1631_s30  ;;  %788 = vrot.lane.b32.xlu1 %v1853_v57, %s1631_s30 }
 0x299   :  { %792 = vrot.lane.b32.xlu1 %v775_v3, %s1631_s30 }
 0x29f   :  { %v1135_v6 = vpop.permute.xlu0 %1134  ;;  %v1094_v7 = vpop.permute.xlu1 %1093 }
 0x2a3   :  { %v1053_v8 = vpop.permute.xlu0 %1052  ;;  %v1012_v9 = vpop.permute.xlu1 %1011 }
 0x2a7   :  { %v971_v10 = vpop.permute.xlu0 %970  ;;  %v930_v11 = vpop.permute.xlu1 %929 }
 0x2ab   :  { %v889_v12 = vpop.permute.xlu0 %888  ;;  %v848_v13 = vpop.permute.xlu1 %847 }
 0x2af   :  { %v1137_v14 = vpop.permute.xlu0 %1136  ;;  %v1139_v15 = vpop.permute.xlu1 %1138 }
 0x2b0   :  { %v1146_v17 = vsel %vm409_vm1, %v1135_v6, %v1137_v14  ;;  %v1147_v18 = vsel %vm409_vm1, %v1137_v14, %v1139_v15 }
 0x2b1   :  { %1240 = vmatprep.subr.mxu1 %v1147_v18 }
 0x2b2   :  { %1241 = vmatpush1.msra.mxu1 %v1146_v17 }
 0x2b3   :  { %v1098_v19 = vpop.permute.xlu0 %1097  ;;  %v1096_v20 = vpop.permute.xlu1 %1095 }
 0x2b4   :  { %v1105_v21 = vsel %vm367_vm3, %v1094_v7, %v1096_v20  ;;  %v1106_v16 = vsel %vm367_vm3, %v1096_v20, %v1098_v19 }
 0x2b5   :  { %1242 = vmatprep.subr.mxu1 %v1106_v16 }
 0x2b6   :  { %1243 = vmatpush1.msra.mxu1 %v1105_v21 }
 0x2b7   :  { %v1055_v22 = vpop.permute.xlu0 %1054  ;;  %v1057_v23 = vpop.permute.xlu1 %1056 }
 0x2b8   :  { %v1064_v24 = vsel %vm319_vm2, %v1053_v8, %v1055_v22  ;;  %v1065_v25 = vsel %vm319_vm2, %v1055_v22, %v1057_v23 }
 0x2b9   :  { %1244 = vmatprep.subr.mxu1 %v1065_v25 }
 0x2ba   :  { %1245 = vmatpush1.msra.mxu1 %v1064_v24 }
 0x2bb   :  { %v1016_v26 = vpop.permute.xlu0 %1015  ;;  %v1014_v27 = vpop.permute.xlu1 %1013 }
 0x2bc   :  { %v1023_v28 = vsel %vm277_vm6, %v1012_v9, %v1014_v27  ;;  %v1024_v29 = vsel %vm277_vm6, %v1014_v27, %v1016_v26 }
 0x2bd   :  { %1246 = vmatprep.subr.mxu1 %v1024_v29 }
 0x2be   :  { %1247 = vmatpush1.msra.mxu1 %v1023_v28 }
 0x2bf   :  { %v973_v30 = vpop.permute.xlu0 %972  ;;  %v975_v31 = vpop.permute.xlu1 %974 }
 0x2c0   :  { %v982_v33 = vsel %vm229_vm5, %v971_v10, %v973_v30  ;;  %v983_v34 = vsel %vm229_vm5, %v973_v30, %v975_v31 }
 0x2c1   :  { %1248 = vmatprep.subr.mxu1 %v983_v34 }
 0x2c2   :  { %1249 = vmatpush1.msra.mxu1 %v982_v33 }
 0x2c3   :  { %v934_v35 = vpop.permute.xlu0 %933  ;;  %v932_v36 = vpop.permute.xlu1 %931 }
 0x2c4   :  { %v941_v37 = vsel %vm187_vm8, %v930_v11, %v932_v36  ;;  %v942_v38 = vsel %vm187_vm8, %v932_v36, %v934_v35 }
 0x2c5   :  { %1250 = vmatprep.subr.mxu1 %v942_v38 }
 0x2c6   :  { %1251 = vmatpush1.msra.mxu1 %v941_v37 }
 0x2c7   :  { %v891_v39 = vpop.permute.xlu0 %890  ;;  %v893_v40 = vpop.permute.xlu1 %892 }
 0x2c8   :  { %v900_v41 = vsel %vm139_vm7, %v889_v12, %v891_v39  ;;  %v901_v43 = vsel %vm139_vm7, %v891_v39, %v893_v40 }
 0x2c9   :  { %1252 = vmatprep.subr.mxu1 %v901_v43 }
 0x2ca   :  { %1253 = vmatpush1.msra.mxu1 %v900_v41 }
 0x2cb   :  { %v852_v44 = vpop.permute.xlu0 %851  ;;  %v850_v46 = vpop.permute.xlu1 %849 }
 0x2cc   :  { %v859_v48 = vsel %vm96_vm9, %v848_v13, %v850_v46  ;;  %v860_v32 = vsel %vm96_vm9, %v850_v46, %v852_v44 }
 0x2cd   :  { %1254 = vmatprep.subr.mxu1 %v860_v32 }
 0x2ce   :  { %1255 = vmatpush1.msra.mxu1 %v859_v48 }
 0x2cf   :  { %v1141_v51 = vpop.permute.xlu0 %1140  ;;  %v1100_v52 = vpop.permute.xlu1 %1099  ;;  %1513 = vmatprep.subr.msk.mxu1 %vm735_vm4, %v1829_v49 }
 0x2d0   :  { %v1148_v53 = vsel %vm409_vm1, %v1139_v15, %v1141_v51  ;;  %v1107_v57 = vsel %vm367_vm3, %v1098_v19, %v1100_v52  ;;  %1257 = vmatpush1.msra.mxu1 %v1848_v56 }
 0x2d1   :  { %1490 = vmatmul.mubr.msk.f32.vlgmr.msra.gmra.mxu1 %vm1223_vm12, %v1946_v5 }
 0x2d2   :  { %1432 = vmatprep.mubr.f32.mxu1 %v1636_v63 }
 0x2d3   :  { %v1059_v58 = vpop.permute.xlu0 %1058  ;;  %v1018_v54 = vpop.permute.xlu1 %1017 }
 0x2d4   :  { %v1066_v60 = vsel %vm319_vm2, %v1057_v23, %v1059_v58  ;;  %v1025_v61 = vsel %vm277_vm6, %v1016_v26, %v1018_v54 }
 0x2d7   :  { %v977_v0 = vpop.permute.xlu0 %976  ;;  %v936_v42 = vpop.permute.xlu1 %935 }
 0x2d8   :  { %v984_v49 = vsel %vm229_vm5, %v975_v31, %v977_v0  ;;  %v943_v1 = vsel %vm187_vm8, %v934_v35, %v936_v42 }
 0x2db   :  { %v895_v2 = vpop.permute.xlu0 %894  ;;  %v1988_v3 = vpop.permute.xlu1 %853 }
 0x2dc   :  { %v902_v56 = vsel %vm139_vm7, %v893_v40, %v895_v2  ;;  %v1993_v63 = vsel %vm96_vm9, %v852_v44, %v1988_v3 }
 0x2df   :  { %v1102_v4 = vpop.permute.xlu0 %1101  ;;  %v1143_v6 = vpop.permute.xlu1 %1142 }
 0x2e0   :  { %v1108_v7 = vsel %vm367_vm3, %v1100_v52, %v1102_v4  ;;  %v1149_v8 = vsel %vm409_vm1, %v1141_v51, %v1143_v6 }
 0x2e1   :  { %1311 = vmatprep.subr.mxu0 %v1149_v8 }
 0x2e2   :  { %1312 = vmatpush1.msra.mxu0 %v1148_v53 }
 0x2e3   :  { %v1020_v9 = vpop.permute.xlu0 %1019  ;;  %v1061_v10 = vpop.permute.xlu1 %1060  ;;  %1313 = vmatprep.subr.mxu0 %v1108_v7 }
 0x2e4   :  { %v1026_v11 = vsel %vm277_vm6, %v1018_v54, %v1020_v9  ;;  %v1067_v12 = vsel %vm319_vm2, %v1059_v58, %v1061_v10  ;;  %1314 = vmatpush1.msra.mxu0 %v1107_v57 }
 0x2e5   :  { %1315 = vmatprep.subr.mxu0 %v1067_v12 }
 0x2e6   :  { %1316 = vmatpush1.msra.mxu0 %v1066_v60 }
 0x2e7   :  { %v938_v13 = vpop.permute.xlu0 %937  ;;  %v979_v14 = vpop.permute.xlu1 %978  ;;  %1317 = vmatprep.subr.mxu0 %v1026_v11 }
 0x2e8   :  { %v944_v15 = vsel %vm187_vm8, %v936_v42, %v938_v13  ;;  %v985_v17 = vsel %vm229_vm5, %v977_v0, %v979_v14  ;;  %1318 = vmatpush1.msra.mxu0 %v1025_v61 }
 0x2e9   :  { %1319 = vmatprep.subr.mxu0 %v985_v17 }
 0x2ea   :  { %1320 = vmatpush1.msra.mxu0 %v984_v49 }
 0x2eb   :  { %v1145_v18 = vpop.permute.xlu0 %1144  ;;  %v897_v19 = vpop.permute.xlu1 %896  ;;  %1321 = vmatprep.subr.mxu0 %v944_v15 }
 0x2ec   :  { %v1150_v20 = vsel %vm409_vm1, %v1143_v6, %v1145_v18  ;;  %1162 = vst.msk [vmem:[#allocation3 + $0x1a8] sm:$0xff] %vm810_vm0, %v1145_v18  ;;  %v903_v21 = vsel %vm139_vm7, %v895_v2, %v897_v19  ;;  %1322 = vmatpush1.msra.mxu0 %v943_v1 }
 0x2ed   :  { %1323 = vmatprep.subr.mxu0 %v903_v21 }
 0x2ee   :  { %1324 = vmatpush1.msra.mxu0 %v902_v56 }
 0x2ef   :  { %v1063_v16 = vpop.permute.xlu0 %1062  ;;  %v1104_v22 = vpop.permute.xlu1 %1103 }
 0x2f0   :  { %v1068_v23 = vsel %vm319_vm2, %v1061_v10, %v1063_v16  ;;  %1080 = vst.msk [vmem:[#allocation3 + $0x148] sm:$0xff] %vm810_vm0, %v1063_v16  ;;  %v1109_v24 = vsel %vm367_vm3, %v1102_v4, %v1104_v22  ;;  %1121 = vst.msk [vmem:[#allocation3 + $0x178] sm:$0xff] %vm810_vm0, %v1104_v22 }
 0x2f3   :  { %v981_v25 = vpop.permute.xlu0 %980  ;;  %v1022_v26 = vpop.permute.xlu1 %1021  ;;  %v1217_v27 = vld [vmem:[#allocation3 + $0x1a8] sm:$0xff] }
 0x2f4   :  { %v986_v28 = vsel %vm229_vm5, %v979_v14, %v981_v25  ;;  %998 = vst.msk [vmem:[#allocation3 + $0xe8] sm:$0xff] %vm810_vm0, %v981_v25  ;;  %v1027_v29 = vsel %vm277_vm6, %v1020_v9, %v1022_v26  ;;  %1039 = vst.msk [vmem:[#allocation3 + $0x118] sm:$0xff] %vm810_vm0, %v1022_v26  ;;  %1382 = vmatprep.subr.mxu1 %v1217_v27 }
 0x2f5   :  { %1383 = vmatpush1.msra.mxu1 %v1150_v20 }
 0x2f7   :  { %v899_v30 = vpop.permute.xlu0 %898  ;;  %v940_v31 = vpop.permute.xlu1 %939  ;;  %v1211_v33 = vld [vmem:[#allocation3 + $0x178] sm:$0xff]  ;;  %v1205_v36 = vld [vmem:[#allocation3 + $0x148] sm:$0xff] }
 0x2f8   :  { %v904_v34 = vsel %vm139_vm7, %v897_v19, %v899_v30  ;;  %916 = vst.msk [vmem:[#allocation3 + $0x88] sm:$0xff] %vm810_vm0, %v899_v30  ;;  %v945_v35 = vsel %vm187_vm8, %v938_v13, %v940_v31  ;;  %957 = vst.msk [vmem:[#allocation3 + $0xb8] sm:$0xff] %vm810_vm0, %v940_v31  ;;  %1384 = vmatprep.subr.mxu1 %v1211_v33 }
 0x2f9   :  { %1385 = vmatpush1.msra.mxu1 %v1109_v24 }
 0x2fa   :  { %1386 = vmatprep.subr.mxu1 %v1205_v36 }
 0x2fb   :  { %v856_v37 = vpop.permute.xlu0 %855  ;;  %1387 = vmatpush1.msra.mxu1 %v1068_v23  ;;  %v858_v38 = vpop.permute.xlu1 %857  ;;  %v1199_v39 = vld [vmem:[#allocation3 + $0x118] sm:$0xff]  ;;  %v1193_v43 = vld [vmem:[#allocation3 + $0xe8] sm:$0xff] }
 0x2fc   :  { %v862_v40 = vsel %vm96_vm9, %v1988_v3, %v856_v37  ;;  %v863_v41 = vsel %vm96_vm9, %v856_v37, %v858_v38  ;;  %875 = vst.msk [vmem:[#allocation3 + $0x58] sm:$0xff] %vm810_vm0, %v858_v38  ;;  %1388 = vmatprep.subr.mxu1 %v1199_v39 }
 0x2fd   :  { %1389 = vmatpush1.msra.mxu1 %v1027_v29  ;;  %1325 = vmatprep.subr.mxu0 %v862_v40 }
 0x2fe   :  { %1390 = vmatprep.subr.mxu1 %v1193_v43  ;;  %1326 = vmatpush1.msra.mxu0 %v1993_v63 }
 0x2ff   :  { %1391 = vmatpush1.msra.mxu1 %v986_v28  ;;  %v783_v44 = vpop.permute.xlu1 %782  ;;  %v1187_v46 = vld [vmem:[#allocation3 + $0xb8] sm:$0xff]  ;;  %1514 = vmatprep.subr.msk.mxu0 %vm737_vm11, %v1846_v55  ;;  %v1181_v48 = vld [vmem:[#allocation3 + $0x88] sm:$0xff] }
 0x300   :  { %1392 = vmatprep.subr.mxu1 %v1187_v46  ;;  %1515 = vmatpush1.msk.msra.mxu0 %vm736_vm10, %v1837_v50 }
 0x301   :  { %1393 = vmatpush1.msra.mxu1 %v945_v35  ;;  %1491 = vmatmul.mubr.msk.f32.vlgmr.msra.gmra.mxu0 %vm1223_vm12, %v1946_v5 }
 0x302   :  { %1394 = vmatprep.subr.mxu1 %v1181_v48 }
 0x303   :  { %1395 = vmatpush1.msra.mxu1 %v904_v34  ;;  %v785_v32 = vpop.permute.xlu1 %784  ;;  %v1175_v51 = vld [vmem:[#allocation3 + $0x58] sm:$0xff] }
 0x304   :  { %v794_v52 = vsel %vm229_vm5, %v783_v44, %v785_v32  ;;  %1396 = vmatprep.subr.mxu1 %v1175_v51 }
 0x305   :  { %805 = vst [vmem:[#allocation11] sm:$0xff] %v794_v52  ;;  %1397 = vmatpush1.msra.mxu1 %v863_v41 }
 0x306   :  { %1398 = vmatprep.subr.mxu1 %v1169_v47 }
 0x307   :  { %1516 = vmatpush1.msk.msra.mxu1 %vm738_vm13, %v1875_v62  ;;  %v789_v45 = vpop.permute.xlu1 %788 }
 0x308   :  { %v1221_v50 = vpop.permute.xlu0 %1220  ;;  %1492 = vmatmul.mubr.msk.f32.vlgmr.msra.gmra.mxu1 %vm1223_vm12, %v1946_v5 }
 0x30b   :  { %v793_v55 = vpop.permute.xlu1 %792 }
 0x30c   :  { %811 = vst.msk [vmem:[#allocation11 + $0x28] sm:$0xff] %vm810_vm0, %v793_v55  ;;  %v787_v53 = vpop.permute.xlu0 %786 }
 0x30d   :  { %v795_v57 = vsel %vm229_vm5, %v785_v32, %v787_v53  ;;  %v796_v58 = vsel %vm229_vm5, %v787_v53, %v789_v45 }
 0x30e   :  { %806 = vst [vmem:[#allocation11 + $0x8] sm:$0xff] %v795_v57  ;;  %807 = vst [vmem:[#allocation11 + $0x10] sm:$0xff] %v796_v58 }
 0x310   :  { %v791_v54 = vpop.permute.xlu0 %790 }
 0x311   :  { %v797_v60 = vsel %vm229_vm5, %v789_v45, %v791_v54  ;;  %v798_v59 = vsel %vm229_vm5, %v791_v54, %v793_v55 }
 0x312   :  { %808 = vst [vmem:[#allocation11 + $0x18] sm:$0xff] %v797_v60  ;;  %809 = vst [vmem:[#allocation11 + $0x20] sm:$0xff] %v798_v59 }
 0x313   :  { %1588 = shalt.err (!%p1585_p5)
}
 0x314   :  { %1460 = dma.vmem_to_hbm [thread:$0]  %s1458_s11, 768, %s2050_s3, [#allocation7]  }
 0x315   :  { %s1642_s3 = smov [#allocation12]  }
 0x316   :  { %s1467_s15 = sshll.u32 %s1642_s3, 4  ;;  %s1468_s15 = int_to_ptr.vmem [resolvable:$true] %s1467_s15 }
 0x317   :  { %s1597_s16 = scalar_lea.vmem %s1468_s15, 768  ;;  %p1602_p7 = scmp.lt.s32.totalorder %s1468_s15, %s1468_s15 }
 0x318   :  { %p1598_p6 = scmp.ne.s32.totalorder %s1468_s15, %s1597_s16  ;;  %p1603_p8 = scmp.lt.s32.totalorder %s1597_s16, %s1597_s16 }
 0x31a   :  { %p1604_p9 = por %p1603_p8, %p1602_p7 }
 0x31c   :  { %p1605_p10 = pnand %p1604_p9, %p1598_p6 }
 0x391   :  { %v1292_v62 = vpop.f32.mrf.mxu1 }
 0x392   :  { %v1293_v5 = vadd.f32 %v1292_v62, %v1221_v50 }
 0x393   :  { %v1294_v61 = vpop.f32.mrf.mxu1 }
 0x394   :  { %v1439_v0 = vmax.f32 %v1293_v5, 0.0  ;;  %v1295_v42 = vadd.f32 %v1294_v61, %v1221_v50 }
 0x396   :  { %1445 = vst [vmem:[#allocation12] sm:$0xff] %v1439_v0  ;;  %v1440_v49 = vmax.f32 %v1295_v42, 0.0 }
 0x398   :  { %1446 = vst [vmem:[#allocation12 + $0x8] sm:$0xff] %v1440_v49 }
 0x3c1   :  { %v1363_v1 = vpop.f32.mrf.mxu0 }
 0x3c2   :  { %v1364_v2 = vadd.f32 %v1363_v1, %v1221_v50 }
 0x3c3   :  { %v1365_v3 = vpop.f32.mrf.mxu0 }
 0x3c4   :  { %v1441_v56 = vmax.f32 %v1364_v2, 0.0  ;;  %v1366_v63 = vadd.f32 %v1365_v3, %v1221_v50 }
 0x3c6   :  { %1447 = vst [vmem:[#allocation12 + $0x10] sm:$0xff] %v1441_v56  ;;  %v1442_v4 = vmax.f32 %v1366_v63, 0.0 }
 0x3c8   :  { %v1434_v6 = vpop.f32.mrf.mxu1  ;;  %1448 = vst [vmem:[#allocation12 + $0x18] sm:$0xff] %v1442_v4 }
 0x3c9   :  { %v1435_v7 = vadd.f32 %v1434_v6, %v1221_v50 }
 0x3ca   :  { %v1436_v8 = vpop.f32.mrf.mxu1 }
 0x3cb   :  { %v1443_v9 = vmax.f32 %v1435_v7, 0.0  ;;  %v1437_v10 = vadd.f32 %v1436_v8, %v1221_v50 }
 0x3cd   :  { %1449 = vst [vmem:[#allocation12 + $0x20] sm:$0xff] %v1443_v9  ;;  %v1444_v11 = vmax.f32 %v1437_v10, 0.0 }
 0x3cf   :  { %1450 = vst.msk [vmem:[#allocation12 + $0x28] sm:$0xff] %vm810_vm0, %v1444_v11 }
 0x3d0   :  { %1608 = shalt.err (!%p1605_p10)
}
 0x3d1   :  { %1470 = dma.vmem_to_hbm [thread:$0]  %s1468_s15, 768, %s2051_s4, [#allocation13]  }
 0x3d2   :  { %1621 = dma.done.wait [#allocation7], 768  }
 0x3d3   :  { %1622 = vsyncadd [#allocation7], 4294966528 }
 0x3d4   :  { %1623 = dma.done.wait [#allocation13], 768  }
 0x3d5   :  { %1624 = vsyncadd [#allocation13], 4294966528 }
 0x3d6   :  { %1477 = vsyncpa [#allocation6], 1 }
 0x3d7   :  { %1478 = vsyncpa [#allocation9], 1 }
 0x3d8   :  { %1479 = vsyncpa [#allocation7], 1 }
 0x3d9   :  { %1480 = vsyncpa [#allocation13], 1 }

</bundles_post_ra>
